<compile_context>
chip_gen: v6e
topology: v6e:2x2x1
jax: 0.10.0
libtpu: 0.0.40
codegen_flags: <defaults>
</compile_context>

<pallas_src>
import functools

import jax
import jax.numpy as jnp
from jax.experimental import pallas as pl
from jax.experimental.pallas import tpu as pltpu


_EPS = 1e-5
_LANES = 128
_PADL = 16            # sublane-aligned left gutter for the conv2 halo scratch


# ------------------------------ small helpers ------------------------------

def _round_up(x, m):
    return (x + m - 1) // m * m


def _pick_tile_m(m, cap=256):
    """Largest divisor of m (<= cap, multiple of 8) leaving >= 2 blocks."""
    best = None
    for t in (256, 128, 64, 32, 16, 8):
        if t <= cap and m % t == 0:
            if m // t >= 2:
                return t
            if best is None:
                best = t
    return best if best is not None else m


def _pick_tile_n(n):
    for t in (256, 128):          # prefer 256-wide N on v6e/v7x MXUs
        if n % t == 0:
            return t
    return n


def _pick_tile_k(k):
    for t in (512, 256, 128):
        if k % t == 0:
            return t
    return k


# -------------------------- fused matmul kernels ---------------------------

def _mm_bias_act_single_k_kernel(x_ref, w_ref, b_ref, o_ref, *, relu):
    """out = act(x @ w + b), K fits in one block: no scratch, single store."""
    y = jnp.dot(x_ref[...], w_ref[...], preferred_element_type=jnp.float32)
    y = y + b_ref[...]
    if relu:
        y = jnp.maximum(y, 0.0)
    o_ref[...] = y.astype(o_ref.dtype)


def _mm_bias_act_ktiled_kernel(x_ref, w_ref, b_ref, o_ref, acc_ref, *, relu):
    """K-tiled variant with an f32 VMEM accumulator (large K only)."""
    @pl.when(pl.program_id(2) == 0)
    def _():
        acc_ref[...] = jnp.zeros_like(acc_ref)

    acc_ref[...] += jnp.dot(x_ref[...], w_ref[...],
                            preferred_element_type=jnp.float32)

    @pl.when(pl.program_id(2) == pl.num_programs(2) - 1)
    def _():
        y = acc_ref[...] + b_ref[...]
        if relu:
            y = jnp.maximum(y, 0.0)
        o_ref[...] = y.astype(o_ref.dtype)


def matmul_bias_act(x, w, b, *, relu, out_dtype):
    """x: [M, K] bf16, w: [K, N] bf16 (BN scale folded), b: [N] f32."""
    m, k = x.shape
    n = w.shape[1]
    tm, tn = _pick_tile_m(m), _pick_tile_n(n)
    b2d = b.reshape(1, n)

    if k <= 1024:
        # Common case here (K = padded channel count = 128..512): no VMEM
        # accumulator round trip, weight block resident across M (innermost).
        kern = functools.partial(_mm_bias_act_single_k_kernel, relu=relu)
        return pl.pallas_call(
            kern,
            out_shape=jax.ShapeDtypeStruct((m, n), out_dtype),
            grid=(n // tn, m // tm),
            in_specs=[
                pl.BlockSpec((tm, k), lambda j, i: (i, 0)),
                pl.BlockSpec((k, tn), lambda j, i: (0, j)),
                pl.BlockSpec((1, tn), lambda j, i: (0, j)),
            ],
            out_specs=pl.BlockSpec((tm, tn), lambda j, i: (i, j)),
            compiler_params=pltpu.CompilerParams(
                dimension_semantics=("parallel", "parallel")),
        )(x, w, b2d)

    tk = _pick_tile_k(k)
    kern = functools.partial(_mm_bias_act_ktiled_kernel, relu=relu)
    return pl.pallas_call(
        kern,
        out_shape=jax.ShapeDtypeStruct((m, n), out_dtype),
        grid=(m // tm, n // tn, k // tk),
        in_specs=[
            pl.BlockSpec((tm, tk), lambda i, j, kk: (i, kk)),
            pl.BlockSpec((tk, tn), lambda i, j, kk: (kk, j)),
            pl.BlockSpec((1, tn), lambda i, j, kk: (0, j)),
        ],
        out_specs=pl.BlockSpec((tm, tn), lambda i, j, kk: (i, j)),
        scratch_shapes=[pltpu.VMEM((tm, tn), jnp.float32)],
        compiler_params=pltpu.CompilerParams(
            dimension_semantics=("parallel", "parallel", "arbitrary")),
    )(x, w, b2d)


# ------------------------------ conv2 kernels -------------------------------

def _conv3x3_s1_kernel(y1_ref, w2_ref, b2_ref, o_ref, xpad_ref, *, h, w):
    """3x3 conv, stride 1, pad 1; halo padding done in-kernel (VMEM scratch).

    y1_ref : [h, w, Cin_p]        one conv1 image (bf16, unpadded)
    w2_ref : [9, Cin_p, tn]       per-tap weights, BN scale folded (bf16)
    b2_ref : [1, tn]              BN shift (f32)
    o_ref  : [h*w, tn]            output (bf16)
    xpad_ref: [h+2, W2, Cin_p]    scratch; data at column offset _PADL
    """
    c = y1_ref.shape[-1]
    xpad_ref[...] = jnp.zeros_like(xpad_ref)
    # 16-sublane-aligned interior placement (left halo sits at col _PADL-1).
    xpad_ref[1:h + 1, _PADL:_PADL + w, :] = y1_ref[...]

    acc = None
    for t in range(9):
        dy, dx = divmod(t, 3)
        col0 = _PADL - 1 + dx
        patch = xpad_ref[dy:dy + h, col0:col0 + w, :].reshape(h * w, c)
        part = jnp.dot(patch, w2_ref[t], preferred_element_type=jnp.float32)
        acc = part if acc is None else acc + part        # local accumulation
    o_ref[...] = jnp.maximum(acc + b2_ref[...], 0.0).astype(o_ref.dtype)


def _conv3x3_s2_kernel(ph_ref, w2_ref, b2_ref, o_ref, *, ho, wo):
    """3x3 conv, stride 2, pad 1 over a phase-split (space-to-depth) input.

    ph_ref : [4, ho+1, wo+1, Cin_p]  phases p = 2*(row parity)+(col parity)
    w2_ref : [9, Cin_p, tn]
    o_ref  : [ho*wo, tn]
    Only the strided ho x wo outputs are ever computed.
    """
    c = ph_ref.shape[-1]
    acc = None
    for t in range(9):
        dy, dx = divmod(t, 3)
        p = (dy % 2) * 2 + (dx % 2)
        ry, rx = dy // 2, dx // 2
        patch = ph_ref[p, ry:ry + ho, rx:rx + wo, :].reshape(ho * wo, c)
        part = jnp.dot(patch, w2_ref[t], preferred_element_type=jnp.float32)
        acc = part if acc is None else acc + part        # local accumulation
    o_ref[...] = jnp.maximum(acc + b2_ref[...], 0.0).astype(o_ref.dtype)


def conv3x3_bn_relu_s1(y1_img, w2, b2):
    """y1_img: [N, h, w, Cin_p] bf16 -> [N, h*w, Cout_p] bf16 (stride 1)."""
    nb, h, w, cin = y1_img.shape
    cout = w2.shape[-1]
    tn = _pick_tile_n(cout)
    w_scr = _PADL + _round_up(w + 1, 16)
    kern = functools.partial(_conv3x3_s1_kernel, h=h, w=w)
    return pl.pallas_call(
        kern,
        out_shape=jax.ShapeDtypeStruct((nb, h * w, cout), jnp.bfloat16),
        grid=(nb, cout // tn),
        in_specs=[
            pl.BlockSpec((None, h, w, cin), lambda b, j: (b, 0, 0, 0)),
            pl.BlockSpec((9, cin, tn), lambda b, j: (0, 0, j)),
            pl.BlockSpec((1, tn), lambda b, j: (0, j)),
        ],
        out_specs=pl.BlockSpec((None, h * w, tn), lambda b, j: (b, 0, j)),
        scratch_shapes=[pltpu.VMEM((h + 2, w_scr, cin), jnp.bfloat16)],
        compiler_params=pltpu.CompilerParams(
            dimension_semantics=("parallel", "parallel")),
    )(y1_img, w2, b2.reshape(1, cout))


def conv3x3_bn_relu_s2(phases, w2, b2, ho, wo):
    """phases: [N*4, ho+1, wo+1, Cin_p] bf16 -> [N, ho*wo, Cout_p] bf16."""
    nb4, php, pwp, cin = phases.shape
    nb = nb4 // 4
    cout = w2.shape[-1]
    tn = _pick_tile_n(cout)
    kern = functools.partial(_conv3x3_s2_kernel, ho=ho, wo=wo)
    return pl.pallas_call(
        kern,
        out_shape=jax.ShapeDtypeStruct((nb, ho * wo, cout), jnp.bfloat16),
        grid=(nb, cout // tn),
        in_specs=[
            pl.BlockSpec((4, php, pwp, cin), lambda b, j: (b, 0, 0, 0)),
            pl.BlockSpec((9, cin, tn), lambda b, j: (0, 0, j)),
            pl.BlockSpec((1, tn), lambda b, j: (0, j)),
        ],
        out_specs=pl.BlockSpec((None, ho * wo, tn), lambda b, j: (b, 0, j)),
        compiler_params=pltpu.CompilerParams(
            dimension_semantics=("parallel", "parallel")),
    )(phases, w2, b2.reshape(1, cout))


# -------------------- conv3 + BN3 + shortcut + ReLU fused -------------------

def _final_proj_kernel(y_ref, w3_ref, x_ref, ws_ref, b_ref, o_ref):
    """out = relu(y2 @ w3' + xs @ ws' + b)   (projection shortcut)."""
    acc = jnp.dot(y_ref[...], w3_ref[...], preferred_element_type=jnp.float32)
    acc = acc + jnp.dot(x_ref[...], ws_ref[...],
                        preferred_element_type=jnp.float32)
    o_ref[...] = jnp.maximum(acc + b_ref[...], 0.0).astype(o_ref.dtype)


def final_proj_shortcut(y2, w3, xs, ws, b):
    m, k1 = y2.shape
    k2 = xs.shape[1]
    n = w3.shape[1]
    tm, tn = _pick_tile_m(m), _pick_tile_n(n)
    return pl.pallas_call(
        _final_proj_kernel,
        out_shape=jax.ShapeDtypeStruct((m, n), jnp.bfloat16),
        grid=(n // tn, m // tm),          # M innermost: weights stay resident
        in_specs=[
            pl.BlockSpec((tm, k1), lambda j, i: (i, 0)),
            pl.BlockSpec((k1, tn), lambda j, i: (0, j)),
            pl.BlockSpec((tm, k2), lambda j, i: (i, 0)),
            pl.BlockSpec((k2, tn), lambda j, i: (0, j)),
            pl.BlockSpec((1, tn), lambda j, i: (0, j)),
        ],
        out_specs=pl.BlockSpec((tm, tn), lambda j, i: (i, j)),
        compiler_params=pltpu.CompilerParams(
            dimension_semantics=("parallel", "parallel")),
    )(y2, w3, xs, ws, b.reshape(1, n))


def _final_res_kernel(y_ref, w3_ref, r_ref, b_ref, o_ref):
    """out = relu(y2 @ w3' + b + residual)   (identity shortcut)."""
    acc = jnp.dot(y_ref[...], w3_ref[...], preferred_element_type=jnp.float32)
    acc = acc + r_ref[...].astype(jnp.float32) + b_ref[...]
    o_ref[...] = jnp.maximum(acc, 0.0).astype(o_ref.dtype)


def final_identity_shortcut(y2, w3, r, b):
    m, k1 = y2.shape
    n = w3.shape[1]
    tm, tn = _pick_tile_m(m), _pick_tile_n(n)
    return pl.pallas_call(
        _final_res_kernel,
        out_shape=jax.ShapeDtypeStruct((m, n), jnp.bfloat16),
        grid=(n // tn, m // tm),          # M innermost: weights stay resident
        in_specs=[
            pl.BlockSpec((tm, k1), lambda j, i: (i, 0)),
            pl.BlockSpec((k1, tn), lambda j, i: (0, j)),
            pl.BlockSpec((tm, tn), lambda j, i: (i, j)),
            pl.BlockSpec((1, tn), lambda j, i: (0, j)),
        ],
        out_specs=pl.BlockSpec((tm, tn), lambda j, i: (i, j)),
        compiler_params=pltpu.CompilerParams(
            dimension_semantics=("parallel", "parallel")),
    )(y2, w3, r, b.reshape(1, n))


# ------------------------------- glue (JAX) --------------------------------

def _fold_bn(bn):
    gamma, beta, mean, var = bn
    scale = gamma / jnp.sqrt(var + _EPS)
    shift = beta - mean * scale
    return scale, shift


def _prepare_params(params, cin, cm, ce, cin_p, cm_p, ce_p, has_proj):
    """Fold eval-mode BN into bf16 weights; zero-pad channels to 128 lanes."""
    s1, b1 = _fold_bn(params["bn1"])
    s2, b2 = _fold_bn(params["bn2"])
    s3, b3 = _fold_bn(params["bn3"])

    w1 = params["conv1"].reshape(cm, cin).T * s1[None, :]           # [cin,cm]
    w1p = (jnp.zeros((cin_p, cm_p), jnp.float32)
           .at[:cin, :cm].set(w1).astype(jnp.bfloat16))
    b1p = jnp.pad(b1, (0, cm_p - cm))

    w2 = jnp.transpose(params["conv2"], (2, 3, 1, 0)).reshape(9, cm, cm)
    w2 = w2 * s2[None, None, :]
    w2p = (jnp.zeros((9, cm_p, cm_p), jnp.float32)
           .at[:, :cm, :cm].set(w2).astype(jnp.bfloat16))
    b2p = jnp.pad(b2, (0, cm_p - cm))

    w3 = params["conv3"].reshape(ce, cm).T * s3[None, :]            # [cm,ce]
    w3p = (jnp.zeros((cm_p, ce_p), jnp.float32)
           .at[:cm, :ce].set(w3).astype(jnp.bfloat16))
    b3p = jnp.pad(b3, (0, ce_p - ce))

    if has_proj:
        ss, bs = _fold_bn(params["bn_sc"])
        ws = params["conv_sc"].reshape(ce, cin).T * ss[None, :]     # [cin,ce]
        wsp = (jnp.zeros((cin_p, ce_p), jnp.float32)
               .at[:cin, :ce].set(ws).astype(jnp.bfloat16))
        bfin = b3p + jnp.pad(bs, (0, ce_p - ce))
        return w1p, b1p, w2p, b2p, w3p, wsp, bfin
    return w1p, b1p, w2p, b2p, w3p, None, b3p


def bottleneck_forward(x_nchw, params, *, stride):
    """Pallas implementation of Bottleneck.forward (eval-mode BN)."""
    if stride not in (1, 2):
        raise NotImplementedError("ResNet Bottleneck uses stride 1 or 2")

    nb, cin, h, w = x_nchw.shape
    cm = params["conv1"].shape[0]
    ce = 4 * cm
    cin_p, cm_p, ce_p = (_round_up(c, _LANES) for c in (cin, cm, ce))
    has_proj = (stride != 1) or (cin != ce)

    w1p, b1p, w2p, b2p, w3p, wsp, bfin = _prepare_params(
        params, cin, cm, ce, cin_p, cm_p, ce_p, has_proj)

    # NCHW -> NHWC, zero-pad channels to lane multiple, cast to bf16.
    x_nhwc = jnp.transpose(x_nchw, (0, 2, 3, 1))
    x_nhwc = jnp.pad(x_nhwc, ((0, 0), (0, 0), (0, 0), (0, cin_p - cin)))
    x_nhwc = x_nhwc.astype(jnp.bfloat16)
    x2d = x_nhwc.reshape(nb * h * w, cin_p)

    # ---- conv1 (1x1) + bn1 + relu (single-K fused matmul) ----
    y1 = matmul_bias_act(x2d, w1p, b1p, relu=True, out_dtype=jnp.bfloat16)
    y1_img = y1.reshape(nb, h, w, cm_p)

    # ---- conv2 (3x3, pad=1, stride folded into the kernel) + bn2 + relu ----
    if stride == 1:
        ho, wo = h, w
        y2 = conv3x3_bn_relu_s1(y1_img, w2p, b2p)         # [nb, h*w, cm_p]
    else:
        ho = (h - 1) // 2 + 1
        wo = (w - 1) // 2 + 1
        ph_h, ph_w = ho + 1, wo + 1
        # Space-to-depth phase split of the spatially padded conv1 output
        # (one XLA relayout pass); the kernel only computes strided outputs.
        y1_pad = jnp.pad(y1_img, ((0, 0), (1, 2 * ph_h - h - 1),
                                  (1, 2 * ph_w - w - 1), (0, 0)))
        phases = y1_pad.reshape(nb, ph_h, 2, ph_w, 2, cm_p)
        phases = jnp.transpose(phases, (0, 2, 4, 1, 3, 5))
        phases = phases.reshape(nb * 4, ph_h, ph_w, cm_p)
        y2 = conv3x3_bn_relu_s2(phases, w2p, b2p, ho, wo)  # [nb, ho*wo, cm_p]

    y2_2d = y2.reshape(nb * ho * wo, cm_p)

    # ---- conv3 (1x1) + bn3 + shortcut + relu, fused in one kernel ----
    if has_proj:
        if stride != 1:
            # TODO(synk): express this strided shortcut gather in a kernel
            #             in_spec (pl.Element rows) instead of an XLA slice.
            xs2d = x_nhwc[:, ::stride, ::stride, :].reshape(nb * ho * wo,
                                                            cin_p)
        else:
            xs2d = x2d
        out2d = final_proj_shortcut(y2_2d, w3p, xs2d, wsp, bfin)
    else:
        out2d = final_identity_shortcut(y2_2d, w3p, x2d, bfin)

    # Module boundary: drop padded channels, NHWC -> NCHW, f32.
    out = out2d.reshape(nb, ho, wo, ce_p)[..., :ce].astype(jnp.float32)
    return jnp.transpose(out, (0, 3, 1, 2))


# ---------------------- pure-JAX reference (for check) ---------------------

def _ref_forward(x_nchw, params, stride):
    def conv(x, wgt, s, pad):
        return jax.lax.conv_general_dilated(
            x, wgt, (s, s), pad, dimension_numbers=("NCHW", "OIHW", "NCHW"))

    def bn(x, p):
        g, b, m, v = p
        inv = g / jnp.sqrt(v + _EPS)
        return (x - m[None, :, None, None]) * inv[None, :, None, None] \
            + b[None, :, None, None]

    y = jax.nn.relu(bn(conv(x_nchw, params["conv1"], 1, "VALID"),
                       params["bn1"]))
    y = jax.nn.relu(bn(conv(y, params["conv2"], stride, ((1, 1), (1, 1))),
                       params["bn2"]))
    y = bn(conv(y, params["conv3"], 1, "VALID"), params["bn3"])
    if "conv_sc" in params:
        sc = bn(conv(x_nchw, params["conv_sc"], stride, "VALID"),
                params["bn_sc"])
    else:
        sc = x_nchw
    return jax.nn.relu(y + sc)


# --------------------------------- main ------------------------------------

def _init_params(key, in_channels, out_channels, stride):
    cexp = 4 * out_channels
    ks = jax.random.split(key, 12)

    def bn_params(k, c):
        k1, k2, k3, k4 = jax.random.split(k, 4)
        gamma = jax.random.uniform(k1, (c,), jnp.float32, 0.5, 1.5)
        beta = jax.random.normal(k2, (c,), jnp.float32) * 0.1
        mean = jax.random.normal(k3, (c,), jnp.float32) * 0.1
        var = jax.random.uniform(k4, (c,), jnp.float32, 0.5, 1.5)
        return (gamma, beta, mean, var)

    params = {
        "conv1": jax.random.normal(ks[0], (out_channels, in_channels, 1, 1),
                                   jnp.float32) * 0.1,
        "bn1": bn_params(ks[1], out_channels),
        "conv2": jax.random.normal(ks[2], (out_channels, out_channels, 3, 3),
                                   jnp.float32) * 0.1,
        "bn2": bn_params(ks[3], out_channels),
        "conv3": jax.random.normal(ks[4], (cexp, out_channels, 1, 1),
                                   jnp.float32) * 0.1,
        "bn3": bn_params(ks[5], cexp),
    }
    if stride != 1 or in_channels != cexp:
        params["conv_sc"] = jax.random.normal(
            ks[6], (cexp, in_channels, 1, 1), jnp.float32) * 0.1
        params["bn_sc"] = bn_params(ks[7], cexp)
    return params


def _check(out, ref, shape, tag):
    assert out.shape == ref.shape == shape, (tag, out.shape, ref.shape)
    max_err = float(jnp.max(jnp.abs(out - ref)))
    # bf16 activations/weights with f32 MXU accumulation -> loose tolerance.
    assert jnp.allclose(out, ref, atol=5e-2, rtol=5e-2), (tag, max_err)


if __name__ == "__main__":
    key = jax.random.PRNGKey(0)
    ka, kb, kc, kd = jax.random.split(key, 4)

    # Case A: stride=2, projection shortcut (in=16 -> 4*8=32 out channels).
    N, Cin, H, W = 2, 16, 16, 16
    out_ch, stride = 8, 2
    xA = jax.random.normal(ka, (N, Cin, H, W), jnp.float32)
    pA = _init_params(kb, Cin, out_ch, stride)
    fwdA = jax.jit(functools.partial(bottleneck_forward, stride=stride))
    outA = jax.block_until_ready(fwdA(xA, pA))
    refA = jax.block_until_ready(_ref_forward(xA, pA, stride))
    _check(outA, refA, (N, 4 * out_ch, H // 2, W // 2), "stride2_proj")

    # Case B: stride=1, identity shortcut (in == 4*out == 32 channels).
    CinB, out_chB, strideB = 32, 8, 1
    xB = jax.random.normal(kc, (N, CinB, H, W), jnp.float32)
    pB = _init_params(kd, CinB, out_chB, strideB)
    fwdB = jax.jit(functools.partial(bottleneck_forward, stride=strideB))
    outB = jax.block_until_ready(fwdB(xB, pB))
    refB = jax.block_until_ready(_ref_forward(xB, pB, strideB))
    _check(outB, refB, (N, 4 * out_chB, H, W), "stride1_identity")

    print("KERNEL_OK")
</pallas_src>

<mosaic_0001>
module attributes {stable_mosaic.version = 11 : i64} {
  func.func @_mm_bias_act_single_k_kernel(%arg0: i32, %arg1: i32, %arg2: memref<256x128xbf16, #tpu.memory_space<vmem>>, %arg3: memref<128x128xbf16, #tpu.memory_space<vmem>>, %arg4: memref<1x128xf32, #tpu.memory_space<vmem>>, %arg5: memref<256x128xbf16, #tpu.memory_space<vmem>>) attributes {dimension_semantics = [#tpu.dimension_semantics<parallel>, #tpu.dimension_semantics<parallel>], iteration_bounds = array<i64: 1, 2>, scalar_prefetch = 0 : i64, scratch_operands = 0 : i64, tpu.core_type = #tpu.core_type<tc>, window_params = [{transform_indices = @transform_0, window_bounds = array<i64: 256, 128>}, {transform_indices = @transform_1, window_bounds = array<i64: 128, 128>}, {transform_indices = @transform_2, window_bounds = array<i64: 1, 128>}, {transform_indices = @transform_3, window_bounds = array<i64: 256, 128>}]} {
    %c0 = arith.constant 0 : index
    %c0_0 = arith.constant 0 : index
    %0 = vector.load %arg2[%c0, %c0_0] : memref<256x128xbf16, #tpu.memory_space<vmem>>, vector<256x128xbf16>
    %c0_1 = arith.constant 0 : index
    %c0_2 = arith.constant 0 : index
    %1 = vector.load %arg3[%c0_1, %c0_2] : memref<128x128xbf16, #tpu.memory_space<vmem>>, vector<128x128xbf16>
    %cst = arith.constant dense<0.000000e+00> : vector<256x128xf32>
    %2 = tpu.matmul %0, %1, %cst {dimension_numbers = #tpu.dot_dimension_numbers<[1], [0], [0], [1], [0, 0, 1, 1], [], []>} : vector<256x128xbf16>, vector<128x128xbf16>, vector<256x128xf32> -> vector<256x128xf32>
    %c0_3 = arith.constant 0 : index
    %c0_4 = arith.constant 0 : index
    %3 = vector.load %arg4[%c0_3, %c0_4] : memref<1x128xf32, #tpu.memory_space<vmem>>, vector<1x128xf32>
    %4 = vector.broadcast %3 : vector<1x128xf32> to vector<256x128xf32>
    %5 = arith.addf %2, %4 : vector<256x128xf32>
    %cst_5 = arith.constant 0.000000e+00 : f32
    %6 = vector.broadcast %cst_5 : f32 to vector<256x128xf32>
    %7 = arith.maximumf %5, %6 : vector<256x128xf32>
    %8 = arith.truncf %7 : vector<256x128xf32> to vector<256x128xbf16>
    %c0_6 = arith.constant 0 : index
    %c0_7 = arith.constant 0 : index
    %9 = vector.load %arg5[%c0_6, %c0_7] : memref<256x128xbf16, #tpu.memory_space<vmem>>, vector<256x128xbf16>
    tpu.vector_store %arg5[%c0_6, %c0_7], %8 {strides = array<i32>} : memref<256x128xbf16, #tpu.memory_space<vmem>>, vector<256x128xbf16>,
    return
  }
  func.func @transform_0(%arg0: i32, %arg1: i32) -> (i32, i32) {
    %c0_i32 = arith.constant 0 : i32
    %c0_i32_0 = arith.constant 0 : i32
    return %arg1, %c0_i32 : i32, i32
  }
  func.func @transform_1(%arg0: i32, %arg1: i32) -> (i32, i32) {
    %c0_i32 = arith.constant 0 : i32
    %c0_i32_0 = arith.constant 0 : i32
    return %c0_i32, %arg0 : i32, i32
  }
  func.func @transform_2(%arg0: i32, %arg1: i32) -> (i32, i32) {
    %c0_i32 = arith.constant 0 : i32
    %c0_i32_0 = arith.constant 0 : i32
    return %c0_i32, %arg0 : i32, i32
  }
  func.func @transform_3(%arg0: i32, %arg1: i32) -> (i32, i32) {
    %c0_i32 = arith.constant 0 : i32
    return %arg1, %arg0 : i32, i32
  }
}

module attributes {stable_mosaic.version = 11 : i64} {
  func.func @_conv3x3_s2_kernel(%arg0: i32, %arg1: i32, %arg2: memref<4x9x9x128xbf16, #tpu.memory_space<vmem>>, %arg3: memref<9x128x128xbf16, #tpu.memory_space<vmem>>, %arg4: memref<1x128xf32, #tpu.memory_space<vmem>>, %arg5: memref<1x64x128xbf16, #tpu.memory_space<vmem>>) attributes {dimension_semantics = [#tpu.dimension_semantics<parallel>, #tpu.dimension_semantics<parallel>], iteration_bounds = array<i64: 2, 1>, scalar_prefetch = 0 : i64, scratch_operands = 0 : i64, tpu.core_type = #tpu.core_type<tc>, window_params = [{transform_indices = @transform_0, window_bounds = array<i64: 4, 9, 9, 128>}, {transform_indices = @transform_1, window_bounds = array<i64: 9, 128, 128>}, {transform_indices = @transform_2, window_bounds = array<i64: 1, 128>}, {transform_indices = @transform_3, window_bounds = array<i64: 1, 64, 128>}]} {
    %c0 = arith.constant 0 : index
    %c0_0 = arith.constant 0 : index
    %c0_1 = arith.constant 0 : index
    %c0_2 = arith.constant 0 : index
    %0 = vector.load %arg2[%c0, %c0_0, %c0_1, %c0_2] : memref<4x9x9x128xbf16, #tpu.memory_space<vmem>>, vector<1x8x8x128xbf16>
    %1 = vector.shape_cast %0 : vector<1x8x8x128xbf16> to vector<8x8x128xbf16>
    %2 = vector.shape_cast %1 : vector<8x8x128xbf16> to vector<64x128xbf16>
    %c0_3 = arith.constant 0 : index
    %c0_4 = arith.constant 0 : index
    %c0_5 = arith.constant 0 : index
    %3 = vector.load %arg3[%c0_3, %c0_4, %c0_5] : memref<9x128x128xbf16, #tpu.memory_space<vmem>>, vector<1x128x128xbf16>
    %4 = vector.shape_cast %3 : vector<1x128x128xbf16> to vector<128x128xbf16>
    %cst = arith.constant dense<0.000000e+00> : vector<64x128xf32>
    %5 = tpu.matmul %2, %4, %cst {dimension_numbers = #tpu.dot_dimension_numbers<[1], [0], [0], [1], [0, 0, 1, 1], [], []>} : vector<64x128xbf16>, vector<128x128xbf16>, vector<64x128xf32> -> vector<64x128xf32>
    %c1 = arith.constant 1 : index
    %c0_6 = arith.constant 0 : index
    %c0_7 = arith.constant 0 : index
    %c0_8 = arith.constant 0 : index
    %6 = vector.load %arg2[%c1, %c0_6, %c0_7, %c0_8] : memref<4x9x9x128xbf16, #tpu.memory_space<vmem>>, vector<1x8x8x128xbf16>
    %7 = vector.shape_cast %6 : vector<1x8x8x128xbf16> to vector<8x8x128xbf16>
    %8 = vector.shape_cast %7 : vector<8x8x128xbf16> to vector<64x128xbf16>
    %c1_9 = arith.constant 1 : index
    %c0_10 = arith.constant 0 : index
    %c0_11 = arith.constant 0 : index
    %9 = vector.load %arg3[%c1_9, %c0_10, %c0_11] : memref<9x128x128xbf16, #tpu.memory_space<vmem>>, vector<1x128x128xbf16>
    %10 = vector.shape_cast %9 : vector<1x128x128xbf16> to vector<128x128xbf16>
    %cst_12 = arith.constant dense<0.000000e+00> : vector<64x128xf32>
    %11 = tpu.matmul %8, %10, %cst_12 {dimension_numbers = #tpu.dot_dimension_numbers<[1], [0], [0], [1], [0, 0, 1, 1], [], []>} : vector<64x128xbf16>, vector<128x128xbf16>, vector<64x128xf32> -> vector<64x128xf32>
    %12 = arith.addf %5, %11 : vector<64x128xf32>
    %c0_13 = arith.constant 0 : index
    %c0_14 = arith.constant 0 : index
    %c1_15 = arith.constant 1 : index
    %c0_16 = arith.constant 0 : index
    %13 = vector.load %arg2[%c0_13, %c0_14, %c1_15, %c0_16] : memref<4x9x9x128xbf16, #tpu.memory_space<vmem>>, vector<1x8x8x128xbf16>
    %14 = vector.shape_cast %13 : vector<1x8x8x128xbf16> to vector<8x8x128xbf16>
    %15 = vector.shape_cast %14 : vector<8x8x128xbf16> to vector<64x128xbf16>
    %c2 = arith.constant 2 : index
    %c0_17 = arith.constant 0 : index
    %c0_18 = arith.constant 0 : index
    %16 = vector.load %arg3[%c2, %c0_17, %c0_18] : memref<9x128x128xbf16, #tpu.memory_space<vmem>>, vector<1x128x128xbf16>
    %17 = vector.shape_cast %16 : vector<1x128x128xbf16> to vector<128x128xbf16>
    %cst_19 = arith.constant dense<0.000000e+00> : vector<64x128xf32>
    %18 = tpu.matmul %15, %17, %cst_19 {dimension_numbers = #tpu.dot_dimension_numbers<[1], [0], [0], [1], [0, 0, 1, 1], [], []>} : vector<64x128xbf16>, vector<128x128xbf16>, vector<64x128xf32> -> vector<64x128xf32>
    %19 = arith.addf %12, %18 : vector<64x128xf32>
    %c2_20 = arith.constant 2 : index
    %c0_21 = arith.constant 0 : index
    %c0_22 = arith.constant 0 : index
    %c0_23 = arith.constant 0 : index
    %20 = vector.load %arg2[%c2_20, %c0_21, %c0_22, %c0_23] : memref<4x9x9x128xbf16, #tpu.memory_space<vmem>>, vector<1x8x8x128xbf16>
    %21 = vector.shape_cast %20 : vector<1x8x8x128xbf16> to vector<8x8x128xbf16>
    %22 = vector.shape_cast %21 : vector<8x8x128xbf16> to vector<64x128xbf16>
    %c3 = arith.constant 3 : index
    %c0_24 = arith.constant 0 : index
    %c0_25 = arith.constant 0 : index
    %23 = vector.load %arg3[%c3, %c0_24, %c0_25] : memref<9x128x128xbf16, #tpu.memory_space<vmem>>, vector<1x128x128xbf16>
    %24 = vector.shape_cast %23 : vector<1x128x128xbf16> to vector<128x128xbf16>
    %cst_26 = arith.constant dense<0.000000e+00> : vector<64x128xf32>
    %25 = tpu.matmul %22, %24, %cst_26 {dimension_numbers = #tpu.dot_dimension_numbers<[1], [0], [0], [1], [0, 0, 1, 1], [], []>} : vector<64x128xbf16>, vector<128x128xbf16>, vector<64x128xf32> -> vector<64x128xf32>
    %26 = arith.addf %19, %25 : vector<64x128xf32>
    %c3_27 = arith.constant 3 : index
    %c0_28 = arith.constant 0 : index
    %c0_29 = arith.constant 0 : index
    %c0_30 = arith.constant 0 : index
    %27 = vector.load %arg2[%c3_27, %c0_28, %c0_29, %c0_30] : memref<4x9x9x128xbf16, #tpu.memory_space<vmem>>, vector<1x8x8x128xbf16>
    %28 = vector.shape_cast %27 : vector<1x8x8x128xbf16> to vector<8x8x128xbf16>
    %29 = vector.shape_cast %28 : vector<8x8x128xbf16> to vector<64x128xbf16>
    %c4 = arith.constant 4 : index
    %c0_31 = arith.constant 0 : index
    %c0_32 = arith.constant 0 : index
    %30 = vector.load %arg3[%c4, %c0_31, %c0_32] : memref<9x128x128xbf16, #tpu.memory_space<vmem>>, vector<1x128x128xbf16>
    %31 = vector.shape_cast %30 : vector<1x128x128xbf16> to vector<128x128xbf16>
    %cst_33 = arith.constant dense<0.000000e+00> : vector<64x128xf32>
    %32 = tpu.matmul %29, %31, %cst_33 {dimension_numbers = #tpu.dot_dimension_numbers<[1], [0], [0], [1], [0, 0, 1, 1], [], []>} : vector<64x128xbf16>, vector<128x128xbf16>, vector<64x128xf32> -> vector<64x128xf32>
    %33 = arith.addf %26, %32 : vector<64x128xf32>
    %c2_34 = arith.constant 2 : index
    %c0_35 = arith.constant 0 : index
    %c1_36 = arith.constant 1 : index
    %c0_37 = arith.constant 0 : index
    %34 = vector.load %arg2[%c2_34, %c0_35, %c1_36, %c0_37] : memref<4x9x9x128xbf16, #tpu.memory_space<vmem>>, vector<1x8x8x128xbf16>
    %35 = vector.shape_cast %34 : vector<1x8x8x128xbf16> to vector<8x8x128xbf16>
    %36 = vector.shape_cast %35 : vector<8x8x128xbf16> to vector<64x128xbf16>
    %c5 = arith.constant 5 : index
    %c0_38 = arith.constant 0 : index
    %c0_39 = arith.constant 0 : index
    %37 = vector.load %arg3[%c5, %c0_38, %c0_39] : memref<9x128x128xbf16, #tpu.memory_space<vmem>>, vector<1x128x128xbf16>
    %38 = vector.shape_cast %37 : vector<1x128x128xbf16> to vector<128x128xbf16>
    %cst_40 = arith.constant dense<0.000000e+00> : vector<64x128xf32>
    %39 = tpu.matmul %36, %38, %cst_40 {dimension_numbers = #tpu.dot_dimension_numbers<[1], [0], [0], [1], [0, 0, 1, 1], [], []>} : vector<64x128xbf16>, vector<128x128xbf16>, vector<64x128xf32> -> vector<64x128xf32>
    %40 = arith.addf %33, %39 : vector<64x128xf32>
    %c0_41 = arith.constant 0 : index
    %c1_42 = arith.constant 1 : index
    %c0_43 = arith.constant 0 : index
    %c0_44 = arith.constant 0 : index
    %41 = vector.load %arg2[%c0_41, %c1_42, %c0_43, %c0_44] : memref<4x9x9x128xbf16, #tpu.memory_space<vmem>>, vector<1x8x8x128xbf16>
    %42 = vector.shape_cast %41 : vector<1x8x8x128xbf16> to vector<8x8x128xbf16>
    %43 = vector.shape_cast %42 : vector<8x8x128xbf16> to vector<64x128xbf16>
    %c6 = arith.constant 6 : index
    %c0_45 = arith.constant 0 : index
    %c0_46 = arith.constant 0 : index
    %44 = vector.load %arg3[%c6, %c0_45, %c0_46] : memref<9x128x128xbf16, #tpu.memory_space<vmem>>, vector<1x128x128xbf16>
    %45 = vector.shape_cast %44 : vector<1x128x128xbf16> to vector<128x128xbf16>
    %cst_47 = arith.constant dense<0.000000e+00> : vector<64x128xf32>
    %46 = tpu.matmul %43, %45, %cst_47 {dimension_numbers = #tpu.dot_dimension_numbers<[1], [0], [0], [1], [0, 0, 1, 1], [], []>} : vector<64x128xbf16>, vector<128x128xbf16>, vector<64x128xf32> -> vector<64x128xf32>
    %47 = arith.addf %40, %46 : vector<64x128xf32>
    %c1_48 = arith.constant 1 : index
    %c1_49 = arith.constant 1 : index
    %c0_50 = arith.constant 0 : index
    %c0_51 = arith.constant 0 : index
    %48 = vector.load %arg2[%c1_48, %c1_49, %c0_50, %c0_51] : memref<4x9x9x128xbf16, #tpu.memory_space<vmem>>, vector<1x8x8x128xbf16>
    %49 = vector.shape_cast %48 : vector<1x8x8x128xbf16> to vector<8x8x128xbf16>
    %50 = vector.shape_cast %49 : vector<8x8x128xbf16> to vector<64x128xbf16>
    %c7 = arith.constant 7 : index
    %c0_52 = arith.constant 0 : index
    %c0_53 = arith.constant 0 : index
    %51 = vector.load %arg3[%c7, %c0_52, %c0_53] : memref<9x128x128xbf16, #tpu.memory_space<vmem>>, vector<1x128x128xbf16>
    %52 = vector.shape_cast %51 : vector<1x128x128xbf16> to vector<128x128xbf16>
    %cst_54 = arith.constant dense<0.000000e+00> : vector<64x128xf32>
    %53 = tpu.matmul %50, %52, %cst_54 {dimension_numbers = #tpu.dot_dimension_numbers<[1], [0], [0], [1], [0, 0, 1, 1], [], []>} : vector<64x128xbf16>, vector<128x128xbf16>, vector<64x128xf32> -> vector<64x128xf32>
    %54 = arith.addf %47, %53 : vector<64x128xf32>
    %c0_55 = arith.constant 0 : index
    %c1_56 = arith.constant 1 : index
    %c1_57 = arith.constant 1 : index
    %c0_58 = arith.constant 0 : index
    %55 = vector.load %arg2[%c0_55, %c1_56, %c1_57, %c0_58] : memref<4x9x9x128xbf16, #tpu.memory_space<vmem>>, vector<1x8x8x128xbf16>
    %56 = vector.shape_cast %55 : vector<1x8x8x128xbf16> to vector<8x8x128xbf16>
    %57 = vector.shape_cast %56 : vector<8x8x128xbf16> to vector<64x128xbf16>
    %c8 = arith.constant 8 : index
    %c0_59 = arith.constant 0 : index
    %c0_60 = arith.constant 0 : index
    %58 = vector.load %arg3[%c8, %c0_59, %c0_60] : memref<9x128x128xbf16, #tpu.memory_space<vmem>>, vector<1x128x128xbf16>
    %59 = vector.shape_cast %58 : vector<1x128x128xbf16> to vector<128x128xbf16>
    %cst_61 = arith.constant dense<0.000000e+00> : vector<64x128xf32>
    %60 = tpu.matmul %57, %59, %cst_61 {dimension_numbers = #tpu.dot_dimension_numbers<[1], [0], [0], [1], [0, 0, 1, 1], [], []>} : vector<64x128xbf16>, vector<128x128xbf16>, vector<64x128xf32> -> vector<64x128xf32>
    %61 = arith.addf %54, %60 : vector<64x128xf32>
    %c0_62 = arith.constant 0 : index
    %c0_63 = arith.constant 0 : index
    %62 = vector.load %arg4[%c0_62, %c0_63] : memref<1x128xf32, #tpu.memory_space<vmem>>, vector<1x128xf32>
    %63 = vector.broadcast %62 : vector<1x128xf32> to vector<64x128xf32>
    %64 = arith.addf %61, %63 : vector<64x128xf32>
    %cst_64 = arith.constant 0.000000e+00 : f32
    %65 = vector.broadcast %cst_64 : f32 to vector<64x128xf32>
    %66 = arith.maximumf %64, %65 : vector<64x128xf32>
    %67 = arith.truncf %66 : vector<64x128xf32> to vector<64x128xbf16>
    %c0_65 = arith.constant 0 : index
    %c0_66 = arith.constant 0 : index
    %c0_67 = arith.constant 0 : index
    %68 = vector.load %arg5[%c0_65, %c0_66, %c0_67] : memref<1x64x128xbf16, #tpu.memory_space<vmem>>, vector<1x64x128xbf16>
    %69 = vector.shape_cast %68 : vector<1x64x128xbf16> to vector<64x128xbf16>
    %70 = vector.shape_cast %67 : vector<64x128xbf16> to vector<1x64x128xbf16>
    tpu.vector_store %arg5[%c0_65, %c0_66, %c0_67], %70 {strides = array<i32>} : memref<1x64x128xbf16, #tpu.memory_space<vmem>>, vector<1x64x128xbf16>,
    return
  }
  func.func @transform_0(%arg0: i32, %arg1: i32) -> (i32, i32, i32, i32) {
    %c0_i32 = arith.constant 0 : i32
    %c0_i32_0 = arith.constant 0 : i32
    %c0_i32_1 = arith.constant 0 : i32
    %c0_i32_2 = arith.constant 0 : i32
    return %arg0, %c0_i32, %c0_i32_0, %c0_i32_1 : i32, i32, i32, i32
  }
  func.func @transform_1(%arg0: i32, %arg1: i32) -> (i32, i32, i32) {
    %c0_i32 = arith.constant 0 : i32
    %c0_i32_0 = arith.constant 0 : i32
    %c0_i32_1 = arith.constant 0 : i32
    return %c0_i32, %c0_i32_0, %arg1 : i32, i32, i32
  }
  func.func @transform_2(%arg0: i32, %arg1: i32) -> (i32, i32) {
    %c0_i32 = arith.constant 0 : i32
    %c0_i32_0 = arith.constant 0 : i32
    return %c0_i32, %arg1 : i32, i32
  }
  func.func @transform_3(%arg0: i32, %arg1: i32) -> (i32, i32, i32) {
    %c0_i32 = arith.constant 0 : i32
    %c0_i32_0 = arith.constant 0 : i32
    return %arg0, %c0_i32, %arg1 : i32, i32, i32
  }
}

module attributes {stable_mosaic.version = 11 : i64} {
  func.func @_final_proj_kernel(%arg0: i32, %arg1: i32, %arg2: memref<64x128xbf16, #tpu.memory_space<vmem>>, %arg3: memref<128x128xbf16, #tpu.memory_space<vmem>>, %arg4: memref<64x128xbf16, #tpu.memory_space<vmem>>, %arg5: memref<128x128xbf16, #tpu.memory_space<vmem>>, %arg6: memref<1x128xf32, #tpu.memory_space<vmem>>, %arg7: memref<64x128xbf16, #tpu.memory_space<vmem>>) attributes {dimension_semantics = [#tpu.dimension_semantics<parallel>, #tpu.dimension_semantics<parallel>], iteration_bounds = array<i64: 1, 2>, scalar_prefetch = 0 : i64, scratch_operands = 0 : i64, tpu.core_type = #tpu.core_type<tc>, window_params = [{transform_indices = @transform_0, window_bounds = array<i64: 64, 128>}, {transform_indices = @transform_1, window_bounds = array<i64: 128, 128>}, {transform_indices = @transform_2, window_bounds = array<i64: 64, 128>}, {transform_indices = @transform_3, window_bounds = array<i64: 128, 128>}, {transform_indices = @transform_4, window_bounds = array<i64: 1, 128>}, {transform_indices = @transform_5, window_bounds = array<i64: 64, 128>}]} {
    %c0 = arith.constant 0 : index
    %c0_0 = arith.constant 0 : index
    %0 = vector.load %arg2[%c0, %c0_0] : memref<64x128xbf16, #tpu.memory_space<vmem>>, vector<64x128xbf16>
    %c0_1 = arith.constant 0 : index
    %c0_2 = arith.constant 0 : index
    %1 = vector.load %arg3[%c0_1, %c0_2] : memref<128x128xbf16, #tpu.memory_space<vmem>>, vector<128x128xbf16>
    %cst = arith.constant dense<0.000000e+00> : vector<64x128xf32>
    %2 = tpu.matmul %0, %1, %cst {dimension_numbers = #tpu.dot_dimension_numbers<[1], [0], [0], [1], [0, 0, 1, 1], [], []>} : vector<64x128xbf16>, vector<128x128xbf16>, vector<64x128xf32> -> vector<64x128xf32>
    %c0_3 = arith.constant 0 : index
    %c0_4 = arith.constant 0 : index
    %3 = vector.load %arg4[%c0_3, %c0_4] : memref<64x128xbf16, #tpu.memory_space<vmem>>, vector<64x128xbf16>
    %c0_5 = arith.constant 0 : index
    %c0_6 = arith.constant 0 : index
    %4 = vector.load %arg5[%c0_5, %c0_6] : memref<128x128xbf16, #tpu.memory_space<vmem>>, vector<128x128xbf16>
    %cst_7 = arith.constant dense<0.000000e+00> : vector<64x128xf32>
    %5 = tpu.matmul %3, %4, %cst_7 {dimension_numbers = #tpu.dot_dimension_numbers<[1], [0], [0], [1], [0, 0, 1, 1], [], []>} : vector<64x128xbf16>, vector<128x128xbf16>, vector<64x128xf32> -> vector<64x128xf32>
    %6 = arith.addf %2, %5 : vector<64x128xf32>
    %c0_8 = arith.constant 0 : index
    %c0_9 = arith.constant 0 : index
    %7 = vector.load %arg6[%c0_8, %c0_9] : memref<1x128xf32, #tpu.memory_space<vmem>>, vector<1x128xf32>
    %8 = vector.broadcast %7 : vector<1x128xf32> to vector<64x128xf32>
    %9 = arith.addf %6, %8 : vector<64x128xf32>
    %cst_10 = arith.constant 0.000000e+00 : f32
    %10 = vector.broadcast %cst_10 : f32 to vector<64x128xf32>
    %11 = arith.maximumf %9, %10 : vector<64x128xf32>
    %12 = arith.truncf %11 : vector<64x128xf32> to vector<64x128xbf16>
    %c0_11 = arith.constant 0 : index
    %c0_12 = arith.constant 0 : index
    %13 = vector.load %arg7[%c0_11, %c0_12] : memref<64x128xbf16, #tpu.memory_space<vmem>>, vector<64x128xbf16>
    tpu.vector_store %arg7[%c0_11, %c0_12], %12 {strides = array<i32>} : memref<64x128xbf16, #tpu.memory_space<vmem>>, vector<64x128xbf16>,
    return
  }
  func.func @transform_0(%arg0: i32, %arg1: i32) -> (i32, i32) {
    %c0_i32 = arith.constant 0 : i32
    %c0_i32_0 = arith.constant 0 : i32
    return %arg1, %c0_i32 : i32, i32
  }
  func.func @transform_1(%arg0: i32, %arg1: i32) -> (i32, i32) {
    %c0_i32 = arith.constant 0 : i32
    %c0_i32_0 = arith.constant 0 : i32
    return %c0_i32, %arg0 : i32, i32
  }
  func.func @transform_2(%arg0: i32, %arg1: i32) -> (i32, i32) {
    %c0_i32 = arith.constant 0 : i32
    %c0_i32_0 = arith.constant 0 : i32
    return %arg1, %c0_i32 : i32, i32
  }
  func.func @transform_3(%arg0: i32, %arg1: i32) -> (i32, i32) {
    %c0_i32 = arith.constant 0 : i32
    %c0_i32_0 = arith.constant 0 : i32
    return %c0_i32, %arg0 : i32, i32
  }
  func.func @transform_4(%arg0: i32, %arg1: i32) -> (i32, i32) {
    %c0_i32 = arith.constant 0 : i32
    %c0_i32_0 = arith.constant 0 : i32
    return %c0_i32, %arg0 : i32, i32
  }
  func.func @transform_5(%arg0: i32, %arg1: i32) -> (i32, i32) {
    %c0_i32 = arith.constant 0 : i32
    return %arg1, %arg0 : i32, i32
  }
}

</mosaic_0001>

<bundles_post_ra>
// kernel: bottleneck_forward.3
= control target key start
LH: loop header
LB: loop body
LE: loop exit
PB: predicated region body
PF: predicated region fallthrough
CT: control target
= control target key end

     0   :  { %s1257_s12 = smov 0   ;;  %s1259_s13 = smov 0   ;;  %s1394_s0 = inlined_call_operand.vmem [shape: bf16[512,128], index: 0, kind: input, shape index: {}]   ;;  %s1395_s1 = inlined_call_operand.vmem [shape: bf16[128,128], index: 1, kind: input, shape index: {}]   ;;  %s1396_s2 = inlined_call_operand.vmem [shape: f32[1,128], index: 2, kind: input, shape index: {}]   ;;  %s1397_s3 = inlined_call_operand.vmem [shape: bf16[512,128], index: 3, kind: output, shape index: {}]  }
   0x1   :  { %s1261_s14 = smov 0  }
   0x2 LB: > { %s22_s15 = sadd.s32 1, %s1231_s13  ;;  %p886_p0 = scmp.ge.s32.totalorder %s1235_s14, 1  ;;  %s1235_s14 = sphi %s1261_s14, %s13_s14   ;;  %s1231_s13 = sphi %s1259_s13, %s1399_s13   ;;  %s1227_s12 = sphi %s1257_s12, %s1398_s12  }
   0x3   : > { %p23_p1 = scmp.ge.s32.totalorder %s22_s15, 2  ;;  %p169_p2 = scmp.lt.s32.totalorder %s1235_s14, 3 }
   0x5   : > { %s1401_s15 = smov (%p23_p1, %s22_s15), 0  ;;  %p170_p3 = pnand %p886_p0, %p169_p2 }
   0x6   : > { %s887_s18 = sshll.u32 (!%p170_p3), %s1227_s12, 5 }
   0x7   : > { %173 = sbr.rel (%p170_p3) target bundleno = 275 (0x113), region = 32  ;;  %p204_p4 = scmp.lt.s32.totalorder (!%p170_p3), %s887_s18, 63 }
   0xc   : > { %v1189_v0 = vld [vmem:[%s1395_s1 + $0x38] sm:$0xff]   ;;  %v1190_v1 = vld [vmem:[%s1395_s1 + $0x30] sm:$0xff]   ;;  %s1403_s18 = smov (!%p204_p4, %s887_s18), 63  ;;  %v1191_v2 = vld [vmem:[%s1395_s1 + $0x28] sm:$0xff]  }
   0xd   : > { %1101 = vmatprep.subr.bf16.mxu0 %v1189_v0  ;;  %1149 = vmatprep.subr.bf16.mxu1 %v1189_v0  ;;  %s888_s23 = sshll.u32 %s1403_s18, 2  ;;  %v1192_v3 = vld [vmem:[%s1395_s1 + $0x20] sm:$0xff]   ;;  %v1193_v6 = vld [vmem:[%s1395_s1 + $0x18] sm:$0xff]   ;;  %v1194_v7 = vld [vmem:[%s1395_s1 + $0x10] sm:$0xff]  }
   0xe   : > { %1102 = vmatpush3.bf16.msra.mxu0 %v1189_v0  ;;  %1157 = vmatpush3.bf16.msra.mxu1 %v1189_v0  ;;  %s1292_s26 = scalar_lea.vmem %s1394_s0, %s888_s23  ;;  %v1195_v8 = vld [vmem:[%s1395_s1 + $0x8] sm:$0xff]   ;;  %v1196_v9 = vld [vmem:[%s1395_s1] sm:$0xff]   ;;  %s1343_s17 = scalar_lea.vmem %s1397_s3, %s888_s23 }
   0xf   : > { %1103 = vmatprep.subr.bf16.mxu0 %v1190_v1  ;;  %1150 = vmatprep.subr.bf16.mxu1 %v1190_v1  ;;  %v1197_v4 = vld [vmem:[%s1292_s26] sm:$0xff]   ;;  %v1199_v10 = vld [vmem:[%s1292_s26 + $0x8] sm:$0xff]   ;;  %v1201_v12 = vld [vmem:[%s1292_s26 + $0x10] sm:$0xff]  }
  0x10   : > { %v1198_v5 = vld [vmem:[%s1292_s26 + $0x40] sm:$0xff]   ;;  %1117 = vmatprep.mubr.bf16.mxu0 %v1197_v4  ;;  %v1200_v11 = vld [vmem:[%s1292_s26 + $0x48] sm:$0xff]   ;;  %v1202_v13 = vld [vmem:[%s1292_s26 + $0x50] sm:$0xff]  }
  0x11   : > { %1133 = vmatprep.mubr.bf16.mxu1 %v1198_v5  ;;  %v1203_v14 = vld [vmem:[%s1292_s26 + $0x18] sm:$0xff]   ;;  %v1205_v16 = vld [vmem:[%s1292_s26 + $0x20] sm:$0xff]   ;;  %v1207_v18 = vld [vmem:[%s1292_s26 + $0x28] sm:$0xff]  }
  0x12   : > { %1104 = vmatpush3.bf16.msra.mxu0 %v1190_v1  ;;  %1158 = vmatpush3.bf16.msra.mxu1 %v1190_v1  ;;  %v1204_v15 = vld [vmem:[%s1292_s26 + $0x58] sm:$0xff]   ;;  %v1206_v17 = vld [vmem:[%s1292_s26 + $0x60] sm:$0xff]   ;;  %v1208_v19 = vld [vmem:[%s1292_s26 + $0x68] sm:$0xff]  }
  0x13   : > { %1105 = vmatprep.subr.bf16.mxu0 %v1191_v2  ;;  %1151 = vmatprep.subr.bf16.mxu1 %v1191_v2  ;;  %v1209_v20 = vld [vmem:[%s1292_s26 + $0x30] sm:$0xff]   ;;  %v1211_v22 = vld [vmem:[%s1292_s26 + $0x38] sm:$0xff]   ;;  %v1328_v24 = vld [vmem:[%s1396_s2] ss:$0 sm:$0xff] }
  0x14   : > { %v1210_v21 = vld [vmem:[%s1292_s26 + $0x70] sm:$0xff]   ;;  %v1212_v23 = vld [vmem:[%s1292_s26 + $0x78] sm:$0xff]  }
  0x16   : > { %1106 = vmatpush3.bf16.msra.mxu0 %v1191_v2  ;;  %1159 = vmatpush3.bf16.msra.mxu1 %v1191_v2 }
  0x17   : > { %1107 = vmatprep.subr.bf16.mxu0 %v1192_v3  ;;  %1152 = vmatprep.subr.bf16.mxu1 %v1192_v3 }
  0x1a   : > { %1108 = vmatpush3.bf16.msra.mxu0 %v1192_v3  ;;  %1160 = vmatpush3.bf16.msra.mxu1 %v1192_v3 }
  0x1b   : > { %1109 = vmatprep.subr.bf16.mxu0 %v1193_v6  ;;  %1153 = vmatprep.subr.bf16.mxu1 %v1193_v6 }
  0x1e   : > { %1110 = vmatpush3.bf16.msra.mxu0 %v1193_v6  ;;  %1161 = vmatpush3.bf16.msra.mxu1 %v1193_v6 }
  0x1f   : > { %1111 = vmatprep.subr.bf16.mxu0 %v1194_v7  ;;  %1154 = vmatprep.subr.bf16.mxu1 %v1194_v7 }
  0x22   : > { %1112 = vmatpush3.bf16.msra.mxu0 %v1194_v7  ;;  %1162 = vmatpush3.bf16.msra.mxu1 %v1194_v7 }
  0x23   : > { %1113 = vmatprep.subr.bf16.mxu0 %v1195_v8  ;;  %1155 = vmatprep.subr.bf16.mxu1 %v1195_v8 }
  0x26   : > { %1114 = vmatpush3.bf16.msra.mxu0 %v1195_v8  ;;  %1163 = vmatpush3.bf16.msra.mxu1 %v1195_v8 }
  0x27   : > { %1115 = vmatprep.subr.bf16.mxu0 %v1196_v9  ;;  %1156 = vmatprep.subr.bf16.mxu1 %v1196_v9 }
  0x2a   : > { %1116 = vmatpush3.bf16.msra.mxu0 %v1196_v9  ;;  %1164 = vmatpush3.bf16.msra.mxu1 %v1196_v9 }
  0x2d   : > { %1118 = vmatmul.mubr.bf16.vlgmr.msra.gmra.mxu0 %v1199_v10  ;;  %1134 = vmatmul.mubr.bf16.vlgmr.msra.gmra.mxu1 %v1200_v11 }
  0x2e   : > { %1121 = vmatprep.mubr.bf16.mxu0 %v1201_v12  ;;  %1137 = vmatprep.mubr.bf16.mxu1 %v1202_v13 }
  0x35   : > { %1122 = vmatmul.mubr.bf16.gmra.mxu0 %v1203_v14  ;;  %1138 = vmatmul.mubr.bf16.gmra.mxu1 %v1204_v15 }
  0x36   : > { %1125 = vmatprep.mubr.bf16.mxu0 %v1205_v16  ;;  %1141 = vmatprep.mubr.bf16.mxu1 %v1206_v17 }
  0x3d   : > { %1126 = vmatmul.mubr.bf16.gmra.mxu0 %v1207_v18  ;;  %1142 = vmatmul.mubr.bf16.gmra.mxu1 %v1208_v19 }
  0x3e   : > { %1129 = vmatprep.mubr.bf16.mxu0 %v1209_v20  ;;  %1145 = vmatprep.mubr.bf16.mxu1 %v1210_v21 }
  0x45   : > { %1130 = vmatmul.mubr.bf16.gmra.mxu0 %v1211_v22  ;;  %1146 = vmatmul.mubr.bf16.gmra.mxu1 %v1212_v23 }
  0xed   : > { %v1119_v25 = vpop.f32.mrf.mxu0  ;;  %v1135_v26 = vpop.f32.mrf.mxu1 }
  0xee   : > { %v468_v27 = vadd.f32 %v1119_v25, %v1328_v24  ;;  %v532_v28 = vadd.f32 %v1135_v26, %v1328_v24 }
  0xef   : > { %v459_v29 = vpop.f32.mrf.mxu0  ;;  %v523_v30 = vpop.f32.mrf.mxu1 }
  0xf0   : > { %v460_v31 = vadd.f32 %v1328_v24, %v459_v29  ;;  %v524_v32 = vadd.f32 %v1328_v24, %v523_v30  ;;  %v588_v37 = vmax.f32 %v468_v27, 0.0  ;;  %v604_v38 = vmax.f32 %v532_v28, 0.0 }
  0xf1   : > { %v1120_v33 = vpop.f32.mrf.mxu0  ;;  %v1136_v34 = vpop.f32.mrf.mxu1 }
  0xf2   : > { %v471_v35 = vadd.f32 %v1120_v33, %v1328_v24  ;;  %v535_v36 = vadd.f32 %v1136_v34, %v1328_v24  ;;  %v586_v45 = vmax.f32 %v460_v31, 0.0  ;;  %v602_v46 = vmax.f32 %v524_v32, 0.0 }
  0xf3   : > { %v462_v39 = vpop.f32.mrf.mxu0  ;;  %v526_v40 = vpop.f32.mrf.mxu1 }
  0xf4   : > { %v589_v41 = vmax.f32 %v471_v35, 0.0  ;;  %v605_v42 = vmax.f32 %v535_v36, 0.0  ;;  %v463_v43 = vadd.f32 %v1328_v24, %v462_v39  ;;  %v527_v44 = vadd.f32 %v1328_v24, %v526_v40 }
  0xf5   : > { %v1123_v47 = vpop.f32.mrf.mxu0  ;;  %v1139_v48 = vpop.f32.mrf.mxu1 }
  0xf6   : > { %v990_v49 = vpack.c.bf16 %v589_v41, %v588_v37  ;;  %v1030_v50 = vpack.c.bf16 %v605_v42, %v604_v38  ;;  %v587_v51 = vmax.f32 %v463_v43, 0.0  ;;  %v603_v52 = vmax.f32 %v527_v44, 0.0 }
  0xf7   : > { %v484_v53 = vadd.f32 %v1123_v47, %v1328_v24  ;;  %v548_v54 = vadd.f32 %v1139_v48, %v1328_v24  ;;  %v475_v55 = vpop.f32.mrf.mxu0  ;;  %v539_v56 = vpop.f32.mrf.mxu1 }
  0xf8   : > { %1062 = vst [vmem:[%s1343_s17 + $0x8] sm:$0xff] %v990_v49   ;;  %1070 = vst [vmem:[%s1343_s17 + $0x48] sm:$0xff] %v1030_v50   ;;  %v985_v57 = vpack.c.bf16 %v587_v51, %v586_v45  ;;  %v1025_v58 = vpack.c.bf16 %v603_v52, %v602_v46  ;;  %v476_v59 = vadd.f32 %v1328_v24, %v475_v55 }
  0xf9   : > { %v540_v60 = vadd.f32 %v1328_v24, %v539_v56  ;;  %v1124_v61 = vpop.f32.mrf.mxu0  ;;  %v1140_v62 = vpop.f32.mrf.mxu1  ;;  %v592_v1 = vmax.f32 %v484_v53, 0.0  ;;  %v608_v2 = vmax.f32 %v548_v54, 0.0 }
  0xfa   : > { %986 = vst [vmem:[%s1343_s17] sm:$0xff] %v985_v57   ;;  %1069 = vst [vmem:[%s1343_s17 + $0x40] sm:$0xff] %v1025_v58   ;;  %v487_v63 = vadd.f32 %v1124_v61, %v1328_v24  ;;  %v551_v0 = vadd.f32 %v1140_v62, %v1328_v24  ;;  %v590_v9 = vmax.f32 %v476_v59, 0.0 }
  0xfb   : > { %v478_v3 = vpop.f32.mrf.mxu0  ;;  %v542_v4 = vpop.f32.mrf.mxu1  ;;  %v606_v10 = vmax.f32 %v540_v60, 0.0 }
  0xfc   : > { %v593_v5 = vmax.f32 %v487_v63, 0.0  ;;  %v609_v6 = vmax.f32 %v551_v0, 0.0  ;;  %v479_v7 = vadd.f32 %v1328_v24, %v478_v3  ;;  %v543_v8 = vadd.f32 %v1328_v24, %v542_v4 }
  0xfd   : > { %v1127_v11 = vpop.f32.mrf.mxu0  ;;  %v1143_v12 = vpop.f32.mrf.mxu1 }
  0xfe   : > { %v1000_v13 = vpack.c.bf16 %v593_v5, %v592_v1  ;;  %v1040_v14 = vpack.c.bf16 %v609_v6, %v608_v2  ;;  %v591_v15 = vmax.f32 %v479_v7, 0.0  ;;  %v607_v16 = vmax.f32 %v543_v8, 0.0 }
  0xff   : > { %v500_v17 = vadd.f32 %v1127_v11, %v1328_v24  ;;  %v564_v18 = vadd.f32 %v1143_v12, %v1328_v24  ;;  %v491_v19 = vpop.f32.mrf.mxu0  ;;  %v555_v20 = vpop.f32.mrf.mxu1 }
 0x100   : > { %1064 = vst [vmem:[%s1343_s17 + $0x18] sm:$0xff] %v1000_v13   ;;  %1072 = vst [vmem:[%s1343_s17 + $0x58] sm:$0xff] %v1040_v14   ;;  %v995_v21 = vpack.c.bf16 %v591_v15, %v590_v9  ;;  %v1035_v22 = vpack.c.bf16 %v607_v16, %v606_v10  ;;  %v492_v23 = vadd.f32 %v1328_v24, %v491_v19 }
 0x101   : > { %v556_v25 = vadd.f32 %v1328_v24, %v555_v20  ;;  %v1128_v26 = vpop.f32.mrf.mxu0  ;;  %v1144_v27 = vpop.f32.mrf.mxu1  ;;  %v596_v30 = vmax.f32 %v500_v17, 0.0  ;;  %v612_v31 = vmax.f32 %v564_v18, 0.0 }
 0x102   : > { %1063 = vst [vmem:[%s1343_s17 + $0x10] sm:$0xff] %v995_v21   ;;  %1071 = vst [vmem:[%s1343_s17 + $0x50] sm:$0xff] %v1035_v22   ;;  %v503_v28 = vadd.f32 %v1128_v26, %v1328_v24  ;;  %v567_v29 = vadd.f32 %v1144_v27, %v1328_v24  ;;  %v594_v38 = vmax.f32 %v492_v23, 0.0 }
 0x103   : > { %v494_v32 = vpop.f32.mrf.mxu0  ;;  %v558_v33 = vpop.f32.mrf.mxu1  ;;  %v610_v39 = vmax.f32 %v556_v25, 0.0 }
 0x104   : > { %v597_v34 = vmax.f32 %v503_v28, 0.0  ;;  %v613_v35 = vmax.f32 %v567_v29, 0.0  ;;  %v495_v36 = vadd.f32 %v1328_v24, %v494_v32  ;;  %v559_v37 = vadd.f32 %v1328_v24, %v558_v33 }
 0x105   : > { %v1131_v40 = vpop.f32.mrf.mxu0  ;;  %v1147_v41 = vpop.f32.mrf.mxu1 }
 0x106   : > { %v1010_v42 = vpack.c.bf16 %v597_v34, %v596_v30  ;;  %v1050_v43 = vpack.c.bf16 %v613_v35, %v612_v31  ;;  %v595_v44 = vmax.f32 %v495_v36, 0.0  ;;  %v611_v45 = vmax.f32 %v559_v37, 0.0 }
 0x107   : > { %v516_v46 = vadd.f32 %v1131_v40, %v1328_v24  ;;  %v580_v47 = vadd.f32 %v1147_v41, %v1328_v24  ;;  %v507_v48 = vpop.f32.mrf.mxu0  ;;  %v571_v49 = vpop.f32.mrf.mxu1 }
 0x108   : > { %1066 = vst [vmem:[%s1343_s17 + $0x28] sm:$0xff] %v1010_v42   ;;  %1074 = vst [vmem:[%s1343_s17 + $0x68] sm:$0xff] %v1050_v43   ;;  %v1005_v50 = vpack.c.bf16 %v595_v44, %v594_v38  ;;  %v1045_v51 = vpack.c.bf16 %v611_v45, %v610_v39  ;;  %v508_v52 = vadd.f32 %v1328_v24, %v507_v48 }
 0x109   : > { %v572_v53 = vadd.f32 %v1328_v24, %v571_v49  ;;  %v1132_v54 = vpop.f32.mrf.mxu0  ;;  %v1148_v55 = vpop.f32.mrf.mxu1  ;;  %v600_v58 = vmax.f32 %v516_v46, 0.0  ;;  %v616_v59 = vmax.f32 %v580_v47, 0.0 }
 0x10a   : > { %1065 = vst [vmem:[%s1343_s17 + $0x20] sm:$0xff] %v1005_v50   ;;  %1073 = vst [vmem:[%s1343_s17 + $0x60] sm:$0xff] %v1045_v51   ;;  %v519_v56 = vadd.f32 %v1132_v54, %v1328_v24  ;;  %v583_v57 = vadd.f32 %v1148_v55, %v1328_v24  ;;  %v598_v2 = vmax.f32 %v508_v52, 0.0 }
 0x10b   : > { %v510_v60 = vpop.f32.mrf.mxu0  ;;  %v574_v61 = vpop.f32.mrf.mxu1  ;;  %v614_v3 = vmax.f32 %v572_v53, 0.0 }
 0x10c   : > { %v601_v62 = vmax.f32 %v519_v56, 0.0  ;;  %v617_v63 = vmax.f32 %v583_v57, 0.0  ;;  %v511_v0 = vadd.f32 %v1328_v24, %v510_v60  ;;  %v575_v1 = vadd.f32 %v1328_v24, %v574_v61 }
 0x10e   : > { %v1020_v4 = vpack.c.bf16 %v601_v62, %v600_v58  ;;  %v1060_v5 = vpack.c.bf16 %v617_v63, %v616_v59  ;;  %v599_v6 = vmax.f32 %v511_v0, 0.0  ;;  %v615_v7 = vmax.f32 %v575_v1, 0.0 }
 0x110   : > { %1068 = vst [vmem:[%s1343_s17 + $0x38] sm:$0xff] %v1020_v4   ;;  %1076 = vst [vmem:[%s1343_s17 + $0x78] sm:$0xff] %v1060_v5   ;;  %v1015_v8 = vpack.c.bf16 %v599_v6, %v598_v2  ;;  %v1055_v9 = vpack.c.bf16 %v615_v7, %v614_v3 }
 0x112   : > { %1067 = vst [vmem:[%s1343_s17 + $0x30] sm:$0xff] %v1015_v8   ;;  %1075 = vst [vmem:[%s1343_s17 + $0x70] sm:$0xff] %v1055_v9  }
 0x113 PF: > { %s13_s14 = sadd.s32 1, %s1235_s14   ;;  %s1398_s12 = smov %s1231_s13 }
 0x114   : > { %p10_p5 = scmp.ge.s32.totalorder %s13_s14, 4   ;;  %s1399_s13 = smov %s1401_s15 }
 0x116   :  { %12 = sbr.rel (!%p10_p5) target bundleno = 2 (0x2), region = 68 }

// kernel: bottleneck_forward.4
= control target key start
LH: loop header
LB: loop body
LE: loop exit
PB: predicated region body
PF: predicated region fallthrough
CT: control target
= control target key end

     0   :  { %s3120_s12 = smov 0   ;;  %s3122_s13 = smov 0   ;;  %s3522_s0 = inlined_call_operand.vmem [shape: bf16[8,9,9,128], index: 0, kind: input, shape index: {}]   ;;  %s3523_s1 = inlined_call_operand.vmem [shape: bf16[9,128,128], index: 1, kind: input, shape index: {}]   ;;  %s3524_s2 = inlined_call_operand.vmem [shape: f32[1,128], index: 2, kind: input, shape index: {}]   ;;  %s3525_s3 = inlined_call_operand.vmem [shape: bf16[2,64,128], index: 3, kind: output, shape index: {}]  }
   0x1   :  { %s3124_s14 = smov 0  }
   0x2 LB: > { %s25_s15 = sadd.s32 1, %s3094_s13  ;;  %p2259_p0 = scmp.ge.s32.totalorder %s3098_s14, 1  ;;  %s3098_s14 = sphi %s3124_s14, %s13_s14   ;;  %s3094_s13 = sphi %s3122_s13, %s3537_s13   ;;  %s3090_s12 = sphi %s3120_s12, %s3536_s12  }
   0x3   : > { %p27_p1 = scmp.ge.s32.totalorder %s25_s15, 2  ;;  %p170_p2 = scmp.lt.s32.totalorder %s3098_s14, 3 }
   0x5   : > { %s3539_s15 = smov (%p27_p1, %s25_s15), 0  ;;  %p171_p3 = pnand %p2259_p0, %p170_p2 }
   0x7   : > { %174 = sbr.rel (%p171_p3) target bundleno = 382 (0x17e), region = 32 }
   0xc   : > { %v2980_v0 = vld [vmem:[%s3523_s1 + $0x78] sm:$0xff]   ;;  %s2260_s18 = sshll.u32 %s3090_s12, 2  ;;  %v2982_v2 = vld [vmem:[%s3523_s1 + $0x70] sm:$0xff]   ;;  %v2984_v4 = vld [vmem:[%s3523_s1 + $0x68] sm:$0xff]   ;;  %vm568_vm0 = vsmask.f32 3328 }
   0xd   : > { %v2981_v1 = vld [vmem:[%s3523_s1 + $0x38] sm:$0xff]   ;;  %p206_p4 = scmp.lt.s32.totalorder %s2260_s18, 7  ;;  %2723 = vmatprep.subr.bf16.mxu0 %v2980_v0  ;;  %v2983_v3 = vld [vmem:[%s3523_s1 + $0x30] sm:$0xff]   ;;  %v2985_v5 = vld [vmem:[%s3523_s1 + $0x28] sm:$0xff]   ;;  %vm569_vm1 = vsmask.f32 7440 }
   0xe   : > { %2747 = vmatprep.subr.bf16.mxu1 %v2981_v1  ;;  %2724 = vmatpush3.bf16.msra.mxu0 %v2980_v0  ;;  %v2986_v6 = vld [vmem:[%s3523_s1 + $0x60] sm:$0xff]   ;;  %v2988_v8 = vld [vmem:[%s3523_s1 + $0x58] sm:$0xff]   ;;  %v2990_v10 = vld [vmem:[%s3523_s1 + $0x50] sm:$0xff]   ;;  %p219_p5 = scmp.lt.s32.totalorder %s3090_s12, 1 }
   0xf   : > { %2748 = vmatpush3.bf16.msra.mxu1 %v2981_v1  ;;  %2725 = vmatprep.subr.bf16.mxu0 %v2982_v2  ;;  %s3541_s18 = smov (!%p206_p4, %s2260_s18), 7  ;;  %v2987_v7 = vld [vmem:[%s3523_s1 + $0x20] sm:$0xff]   ;;  %v2989_v9 = vld [vmem:[%s3523_s1 + $0x18] sm:$0xff]   ;;  %v2991_v11 = vld [vmem:[%s3523_s1 + $0x10] sm:$0xff]  }
  0x10   : > { %2749 = vmatprep.subr.bf16.mxu1 %v2983_v3  ;;  %s2955_s6 = smul.u32 72, %s3541_s18  ;;  %v2992_v14 = vld [vmem:[%s3523_s1 + $0x48] sm:$0xff]   ;;  %v2994_v16 = vld [vmem:[%s3523_s1 + $0x40] sm:$0xff]   ;;  %v3000_v19 = vld [vmem:[%s3523_s1 + $0xb8] sm:$0xff]   ;;  %s3543_s12 = smov (!%p219_p5, %s3090_s12), 1 }
  0x11   : > { %v2993_v15 = vld [vmem:[%s3523_s1 + $0x8] sm:$0xff]   ;;  %v2995_v17 = vld [vmem:[%s3523_s1] sm:$0xff]   ;;  %v3001_v20 = vld [vmem:[%s3523_s1 + $0xf8] sm:$0xff]  }
  0x12   : > { %2726 = vmatpush3.bf16.msra.mxu0 %v2982_v2  ;;  %s3174_s17 = scalar_lea.vmem %s3522_s0, %s2955_s6  ;;  %v3002_v22 = vld [vmem:[%s3523_s1 + $0xb0] sm:$0xff]   ;;  %v3004_v26 = vld [vmem:[%s3523_s1 + $0xa8] sm:$0xff]   ;;  %v3006_v28 = vld [vmem:[%s3523_s1 + $0xa0] sm:$0xff]   ;;  %s2583_s6 = sshll.u32 %s3543_s12, 5 }
  0x13   : > { %2750 = vmatpush3.bf16.msra.mxu1 %v2983_v3  ;;  %2727 = vmatprep.subr.bf16.mxu0 %v2984_v4  ;;  %v2996_v12 = vld [vmem:[%s3174_s17 + $0x48] ss:$8 sps:$4 sm:$0xff]   ;;  %v2998_v18 = vld [vmem:[%s3174_s17 + $0x58] ss:$8 sps:$4 sm:$0xff]   ;;  %v553_v33 = vld [vmem:[%s3174_s17 + $0x4] sm:$0x1]  ;;  %s226_s9 = scalar_lea.vmem %s3525_s3, %s2583_s6 }
  0x14   : > { %2751 = vmatprep.subr.bf16.mxu1 %v2985_v5  ;;  %v2997_v13 = vld [vmem:[%s3174_s17] ss:$8 sps:$4 sm:$0xff]   ;;  %2739 = vmatprep.mubr.bf16.mxu0 %v2996_v12  ;;  %v2999_v21 = vld [vmem:[%s3174_s17 + $0x10] ss:$8 sps:$4 sm:$0xff]   ;;  %v555_v35 = vld [vmem:[%s3174_s17 + $0xc] sm:$0x1] }
  0x15   : > { %2763 = vmatprep.mubr.bf16.mxu1 %v2997_v13  ;;  %v3003_v23 = vld [vmem:[%s3523_s1 + $0xf0] sm:$0xff]   ;;  %v3011_v25 = vld [vmem:[%s3174_s17 + $0x20] ss:$8 sps:$4 sm:$0xff]   ;;  %v3008_v36 = vld [vmem:[%s3523_s1 + $0x98] sm:$0xff]   ;;  %v581_v39 = vshll.u32 %v553_v33, 16  ;;  %v595_v42 = vshll.u32 %v555_v35, 16 }
  0x16   : > { %2728 = vmatpush3.bf16.msra.mxu0 %v2984_v4  ;;  %v3010_v24 = vld [vmem:[%s3174_s17 + $0x68] ss:$8 sps:$4 sm:$0xff]   ;;  %v3012_v29 = vld [vmem:[%s3174_s17 + $0x78] ss:$8 sps:$4 sm:$0xff]   ;;  %v557_v51 = vld [vmem:[%s3174_s17 + $0x14] sm:$0x1] }
  0x17   : > { %2752 = vmatpush3.bf16.msra.mxu1 %v2985_v5  ;;  %2729 = vmatprep.subr.bf16.mxu0 %v2986_v6  ;;  %v3005_v27 = vld [vmem:[%s3523_s1 + $0xe8] sm:$0xff]   ;;  %v3007_v30 = vld [vmem:[%s3523_s1 + $0xe0] sm:$0xff]   ;;  %v3013_v31 = vld [vmem:[%s3174_s17 + $0x30] ss:$8 sps:$4 sm:$0xff]   ;;  %v583_v49 = vrot.slane %v581_v39, 5  ;;  %v609_v57 = vshll.u32 %v557_v51, 16 }
  0x18   : > { %2753 = vmatprep.subr.bf16.mxu1 %v2987_v7  ;;  %v552_v32 = vld [vmem:[%s3174_s17] sm:$0xf]  ;;  %v554_v34 = vld [vmem:[%s3174_s17 + $0x8] sm:$0xf]  ;;  %v3020_v43 = vld [vmem:[%s3174_s17 + $0x90] ss:$8 sps:$4 sm:$0xff]  }
  0x19   : > { %v572_v37 = vshrl.u32 %v552_v32, 16  ;;  %v575_v38 = vshll.u32 %v552_v32, 16  ;;  %v586_v40 = vshrl.u32 %v554_v34, 16  ;;  %v589_v41 = vshll.u32 %v554_v34, 16  ;;  %v3009_v44 = vld [vmem:[%s3523_s1 + $0xd8] sm:$0xff]   ;;  %v3014_v58 = vld [vmem:[%s3523_s1 + $0x90] sm:$0xff]   ;;  %vm3246_vm2 = vmor %vm568_vm0, %vm569_vm1 }
  0x1a   : > { %2730 = vmatpush3.bf16.msra.mxu0 %v2986_v6  ;;  %v556_v48 = vld [vmem:[%s3174_s17 + $0x10] sm:$0xf]  ;;  %v558_v52 = vld [vmem:[%s3174_s17 + $0x18] sm:$0xf]  ;;  %v559_v54 = vld [vmem:[%s3174_s17 + $0x1c] sm:$0x1] }
  0x1b   : > { %2754 = vmatpush3.bf16.msra.mxu1 %v2987_v7  ;;  %2731 = vmatprep.subr.bf16.mxu0 %v2988_v8  ;;  %v574_v45 = vrot.slane %v572_v37, 4  ;;  %v577_v46 = vrot.slane %v575_v38, 5  ;;  %v588_v47 = vrot.slane %v586_v40, 4  ;;  %v591_v50 = vrot.slane %v589_v41, 5  ;;  %v3015_v4 = vld [vmem:[%s3523_s1 + $0xd0] sm:$0xff]   ;;  %v3022_v51 = vld [vmem:[%s3523_s1 + $0x138] sm:$0xff]  }
  0x1c   : > { %2755 = vmatprep.subr.bf16.mxu1 %v2989_v9  ;;  %v600_v55 = vshrl.u32 %v556_v48, 16  ;;  %v603_v56 = vshll.u32 %v556_v48, 16  ;;  %v597_v61 = vrot.slane %v595_v42, 5  ;;  %v614_v62 = vshrl.u32 %v558_v52, 16  ;;  %v566_v40 = vld [vmem:[%s3174_s17 + $0x38] sm:$0xf] }
  0x1d   : > { %v578_v53 = vor.u32 %v577_v46, %v574_v45  ;;  %v592_v60 = vor.u32 %v591_v50, %v588_v47  ;;  %v617_v63 = vshll.u32 %v558_v52, 16  ;;  %v623_v3 = vshll.u32 %v559_v54, 16 }
  0x1e   : > { %2732 = vmatpush3.bf16.msra.mxu0 %v2988_v8  ;;  %v602_v1 = vrot.slane %v600_v55, 4  ;;  %v605_v2 = vrot.slane %v603_v56, 5  ;;  %v3253_v6 = vrot.slane %v609_v57, 5  ;;  %v616_v7 = vrot.slane %v614_v62, 4  ;;  %v3023_v55 = vld [vmem:[%s3523_s1 + $0x178] sm:$0xff]  }
  0x1f   : > { %2756 = vmatpush3.bf16.msra.mxu1 %v2989_v9  ;;  %2733 = vmatprep.subr.bf16.mxu0 %v2990_v10  ;;  %v579_v0 = vrot.slane %v578_v53, 4  ;;  %v593_v5 = vrot.slane %v592_v60, 4  ;;  %v619_v8 = vrot.slane %v617_v63, 5  ;;  %v3016_v9 = vld [vmem:[%s3523_s1 + $0x88] sm:$0xff]   ;;  %v673_v50 = vshll.u32 %v566_v40, 16 }
  0x20   : > { %2757 = vmatprep.subr.bf16.mxu1 %v2991_v11 }
  0x21   : > { %v598_v12 = vsel %vm3246_vm2, %v593_v5, %v597_v61  ;;  %v620_v13 = vor.u32 %v619_v8, %v616_v7  ;;  %v3021_v61 = vld [vmem:[%s3174_s17 + $0xa0] ss:$8 sps:$4 sm:$0xff]   ;;  %v3025_v7 = vld [vmem:[%s3523_s1 + $0x170] sm:$0xff]  }
  0x22   : > { %2734 = vmatpush3.bf16.msra.mxu0 %v2990_v10  ;;  %v584_v10 = vsel %vm3246_vm2, %v579_v0, %v583_v49  ;;  %v670_v49 = vshrl.u32 %v566_v40, 16  ;;  %v2417_v40 = vld [vmem:[%s3174_s17 + $0xa4] sm:$0x1] }
  0x23   : > { %2758 = vmatpush3.bf16.msra.mxu1 %v2991_v11  ;;  %2735 = vmatprep.subr.bf16.mxu0 %v2992_v14  ;;  %v606_v11 = vor.u32 %v605_v2, %v602_v1 }
  0x24   : > { %2759 = vmatprep.subr.bf16.mxu1 %v2993_v15  ;;  %v672_v57 = vrot.slane %v670_v49, 4 }
  0x26   : > { %2736 = vmatpush3.bf16.msra.mxu0 %v2992_v14  ;;  %v2328_v14 = vcombine.low %v584_v10, %v598_v12  ;;  %v3026_v10 = vld [vmem:[%s3523_s1 + $0x128] sm:$0xff]  }
  0x27   : > { %2760 = vmatpush3.bf16.msra.mxu1 %v2993_v15  ;;  %2737 = vmatprep.subr.bf16.mxu0 %v2994_v16  ;;  %v607_v15 = vrot.slane %v606_v11, 4 }
  0x28   : > { %2761 = vmatprep.subr.bf16.mxu1 %v2995_v17 }
  0x2a   : > { %2738 = vmatpush3.bf16.msra.mxu0 %v2994_v16  ;;  %v625_v16 = vrot.slane %v623_v3, 5 }
  0x2b   : > { %2762 = vmatpush3.bf16.msra.mxu1 %v2995_v17  ;;  %2771 = vmatprep.subr.bf16.mxu0 %v3000_v19  ;;  %v3017_v17 = vld [vmem:[%s3523_s1 + $0xc8] sm:$0xff]  }
  0x2c   : > { %2795 = vmatprep.subr.bf16.mxu1 %v3001_v20 }
  0x2d   : > { %2740 = vmatmul.mubr.bf16.vlgmr.msra.gmra.mxu0 %v2998_v18  ;;  %v621_v18 = vrot.slane %v620_v13, 4  ;;  %v3027_v13 = vld [vmem:[%s3523_s1 + $0x168] sm:$0xff]  }
  0x2e   : > { %2764 = vmatmul.mubr.bf16.vlgmr.msra.gmra.mxu1 %v2999_v21  ;;  %2772 = vmatpush3.bf16.msra.mxu0 %v3000_v19  ;;  %v560_v19 = vld [vmem:[%s3174_s17 + $0x20] sm:$0xf]  ;;  %v562_v21 = vld [vmem:[%s3174_s17 + $0x28] sm:$0xf] }
  0x2f   : > { %2796 = vmatpush3.bf16.msra.mxu1 %v3001_v20  ;;  %2773 = vmatprep.subr.bf16.mxu0 %v3002_v22  ;;  %v561_v20 = vld [vmem:[%s3174_s17 + $0x24] sm:$0x1]  ;;  %v626_v32 = vsel %vm3246_vm2, %v621_v18, %v625_v16  ;;  %v3032_v18 = vld [vmem:[%s3523_s1 + $0x118] sm:$0xff]  }
  0x30   : > { %2797 = vmatprep.subr.bf16.mxu1 %v3003_v23  ;;  %2743 = vmatprep.mubr.bf16.mxu0 %v3010_v24  ;;  %v631_v24 = vshll.u32 %v560_v19, 16  ;;  %v3030_v16 = vld [vmem:[%s3523_s1 + $0x120] sm:$0xff]  }
  0x31   : > { %2767 = vmatprep.mubr.bf16.mxu1 %v3011_v25  ;;  %v3018_v25 = vld [vmem:[%s3523_s1 + $0x80] sm:$0xff]  }
  0x32   : > { %2774 = vmatpush3.bf16.msra.mxu0 %v3002_v22  ;;  %v563_v22 = vld [vmem:[%s3174_s17 + $0x2c] sm:$0x1]  ;;  %v633_v34 = vrot.slane %v631_v24, 5 }
  0x33   : > { %2798 = vmatpush3.bf16.msra.mxu1 %v3003_v23  ;;  %2775 = vmatprep.subr.bf16.mxu0 %v3004_v26  ;;  %v628_v23 = vshrl.u32 %v560_v19, 16  ;;  %v651_v35 = vshll.u32 %v563_v22, 16  ;;  %v3040_v19 = vld [vmem:[%s3174_s17 + $0xd8] ss:$8 sps:$4 sm:$0xff]  }
  0x34   : > { %2799 = vmatprep.subr.bf16.mxu1 %v3005_v27  ;;  %v2414_v22 = vld [vmem:[%s3174_s17 + $0x98] sm:$0xf] }
  0x35   : > { %2744 = vmatmul.mubr.bf16.gmra.mxu0 %v3012_v29  ;;  %v645_v29 = vshll.u32 %v562_v21, 16  ;;  %v630_v33 = vrot.slane %v628_v23, 4  ;;  %v2415_v23 = vld [vmem:[%s3174_s17 + $0x9c] sm:$0x1] }
  0x36   : > { %2776 = vmatpush3.bf16.msra.mxu0 %v3004_v26  ;;  %2768 = vmatmul.mubr.bf16.gmra.mxu1 %v3013_v31  ;;  %v612_v26 = vsel %vm3246_vm2, %v607_v15, %v3253_v6  ;;  %v3019_v31 = vld [vmem:[%s3523_s1 + $0xc0] sm:$0xff]   ;;  %v3028_v6 = vld [vmem:[%s3174_s17 + $0xb0] ss:$8 sps:$4 sm:$0xff]  }
  0x37   : > { %2800 = vmatpush3.bf16.msra.mxu1 %v3005_v27  ;;  %2777 = vmatprep.subr.bf16.mxu0 %v3006_v28  ;;  %v637_v27 = vshll.u32 %v561_v20, 16  ;;  %v647_v39 = vrot.slane %v645_v29, 5  ;;  %v634_v42 = vor.u32 %v633_v34, %v630_v33  ;;  %v2329_v60 = vcombine.low %v612_v26, %v626_v32  ;;  %v3029_v15 = vld [vmem:[%s3174_s17 + $0xc0] ss:$8 sps:$4 sm:$0xff]   ;;  %v2412_v20 = vld [vmem:[%s3174_s17 + $0x90] sm:$0xf] }
  0x38   : > { %2801 = vmatprep.subr.bf16.mxu1 %v3007_v30  ;;  %2811 = vmatprep.mubr.bf16.mxu1 %v3020_v43  ;;  %v653_v43 = vrot.slane %v651_v35, 5  ;;  %v1196_v24 = vshrl.u32 %v2412_v20, 16  ;;  %v1219_v29 = vshll.u32 %v2415_v23, 16  ;;  %v3034_v33 = vld [vmem:[%s3523_s1 + $0x110] sm:$0xff]   ;;  %v2424_v23 = vld [vmem:[%s3174_s17 + $0xc0] sm:$0xf] }
  0x39   : > { %2787 = vmatprep.mubr.bf16.mxu0 %v2328_v14  ;;  %v639_v37 = vrot.slane %v637_v27, 5  ;;  %v635_v52 = vrot.slane %v634_v42, 4  ;;  %v1210_v27 = vshrl.u32 %v2414_v22, 16  ;;  %v2419_v42 = vld [vmem:[%s3174_s17 + $0xac] sm:$0x1] }
  0x3a   : > { %2778 = vmatpush3.bf16.msra.mxu0 %v3006_v28  ;;  %v642_v28 = vshrl.u32 %v562_v21, 16  ;;  %v2413_v21 = vld [vmem:[%s3174_s17 + $0x94] sm:$0x1] }
  0x3b   : > { %2802 = vmatpush3.bf16.msra.mxu1 %v3007_v30  ;;  %2779 = vmatprep.subr.bf16.mxu0 %v3008_v36  ;;  %v564_v30 = vld [vmem:[%s3174_s17 + $0x30] sm:$0xf]  ;;  %v640_v62 = vsel %vm3246_vm2, %v635_v52, %v639_v37  ;;  %v1205_v26 = vshll.u32 %v2413_v21, 16  ;;  %v1212_v35 = vrot.slane %v1210_v27, 4  ;;  %v1221_v37 = vrot.slane %v1219_v29, 5 }
  0x3c   : > { %2803 = vmatprep.subr.bf16.mxu1 %v3009_v44  ;;  %v644_v38 = vrot.slane %v642_v28, 4  ;;  %v656_v41 = vshrl.u32 %v564_v30, 16  ;;  %v659_v45 = vshll.u32 %v564_v30, 16  ;;  %v1213_v28 = vshll.u32 %v2414_v22, 16  ;;  %v3033_v30 = vld [vmem:[%s3523_s1 + $0x158] sm:$0xff]  }
  0x3d   : > { %v1207_v34 = vrot.slane %v1205_v26, 5  ;;  %v2426_v29 = vld [vmem:[%s3174_s17 + $0xc8] sm:$0xf] }
  0x3e   : > { %2780 = vmatpush3.bf16.msra.mxu0 %v3008_v36  ;;  %v565_v36 = vld [vmem:[%s3174_s17 + $0x34] sm:$0x1]  ;;  %v648_v47 = vor.u32 %v647_v39, %v644_v38  ;;  %v658_v48 = vrot.slane %v656_v41, 4  ;;  %v661_v53 = vrot.slane %v659_v45, 5  ;;  %v2416_v38 = vld [vmem:[%s3174_s17 + $0xa0] sm:$0xf] }
  0x3f   : > { %2804 = vmatpush3.bf16.msra.mxu1 %v3009_v44  ;;  %2781 = vmatprep.subr.bf16.mxu0 %v3014_v58  ;;  %v567_v44 = vld [vmem:[%s3174_s17 + $0x3c] sm:$0x1]  ;;  %v665_v46 = vshll.u32 %v565_v36, 16  ;;  %v1215_v36 = vrot.slane %v1213_v28, 5  ;;  %v2418_v41 = vld [vmem:[%s3174_s17 + $0xa8] sm:$0xf] }
  0x40   : > { %2805 = vmatprep.subr.bf16.mxu1 %v3015_v4  ;;  %v679_v54 = vshll.u32 %v567_v44, 16  ;;  %v649_v56 = vrot.slane %v648_v47, 4  ;;  %v662_v63 = vor.u32 %v661_v53, %v658_v48  ;;  %v1224_v45 = vshrl.u32 %v2416_v38, 16 }
  0x41   : > { %v667_v1 = vrot.slane %v665_v46, 5  ;;  %v1216_v44 = vor.u32 %v1215_v36, %v1212_v35  ;;  %v1227_v46 = vshll.u32 %v2416_v38, 16  ;;  %v1233_v47 = vshll.u32 %v2417_v40, 16  ;;  %v3046_v35 = vld [vmem:[%s3174_s17 + $0xf8] ss:$8 sps:$4 sm:$0xff]   ;;  %v3044_v40 = vld [vmem:[%s3523_s1 + $0x1b0] sm:$0xff]  }
  0x42   : > { %2782 = vmatpush3.bf16.msra.mxu0 %v3014_v58  ;;  %v675_v58 = vrot.slane %v673_v50, 5  ;;  %v654_v0 = vsel %vm3246_vm2, %v649_v56, %v653_v43  ;;  %v681_v3 = vrot.slane %v679_v54, 5  ;;  %v663_v5 = vrot.slane %v662_v63, 4  ;;  %v3035_v43 = vld [vmem:[%s3523_s1 + $0x150] sm:$0xff]  }
  0x43   : > { %2806 = vmatpush3.bf16.msra.mxu1 %v3015_v4  ;;  %2783 = vmatprep.subr.bf16.mxu0 %v3016_v9  ;;  %v3024_v4 = vld [vmem:[%s3523_s1 + $0x130] sm:$0xff]   ;;  %v2330_v8 = vcombine.low %v640_v62, %v654_v0  ;;  %v1238_v49 = vshrl.u32 %v2418_v41, 16  ;;  %v1241_v50 = vshll.u32 %v2418_v41, 16  ;;  %v1217_v52 = vrot.slane %v1216_v44, 4 }
  0x44   : > { %2807 = vmatprep.subr.bf16.mxu1 %v3017_v17  ;;  %v676_v2 = vor.u32 %v675_v58, %v672_v57  ;;  %v668_v11 = vsel %vm3246_vm2, %v663_v5, %v667_v1  ;;  %v1226_v53 = vrot.slane %v1224_v45, 4  ;;  %v1229_v54 = vrot.slane %v1227_v46, 5  ;;  %v3045_v45 = vld [vmem:[%s3523_s1 + $0x1f0] sm:$0xff]  }
  0x45   : > { %v1240_v57 = vrot.slane %v1238_v49, 4  ;;  %v1243_v58 = vrot.slane %v1241_v50, 5  ;;  %v1235_v0 = vrot.slane %v1233_v47, 5  ;;  %v1294_v38 = vshrl.u32 %v2426_v29, 16 }
  0x46   : > { %2784 = vmatpush3.bf16.msra.mxu0 %v3016_v9  ;;  %v677_v9 = vrot.slane %v676_v2, 4  ;;  %v1230_v62 = vor.u32 %v1229_v54, %v1226_v53 }
  0x47   : > { %2808 = vmatpush3.bf16.msra.mxu1 %v3017_v17  ;;  %2785 = vmatprep.subr.bf16.mxu0 %v3018_v25  ;;  %v3031_v17 = vld [vmem:[%s3523_s1 + $0x160] sm:$0xff]   ;;  %v1244_v1 = vor.u32 %v1243_v58, %v1240_v57  ;;  %v1296_v47 = vrot.slane %v1294_v38, 4  ;;  %v3049_v58 = vld [vmem:[%s3523_s1 + $0x1e8] sm:$0xff]   ;;  %v3065_v38 = vld [vmem:[%s3523_s1 + $0x230] sm:$0xff]  }
  0x48   : > { %2809 = vmatprep.subr.bf16.mxu1 %v3019_v31  ;;  %v682_v12 = vsel %vm3246_vm2, %v677_v9, %v681_v3  ;;  %v1231_v3 = vrot.slane %v1230_v62, 4  ;;  %v3042_v9 = vld [vmem:[%s3523_s1 + $0x1b8] sm:$0xff]   ;;  %v3047_v62 = vld [vmem:[%s3174_s17 + $0x108] ss:$8 sps:$4 sm:$0xff]  }
  0x49   : > { %v2331_v14 = vcombine.low %v668_v11, %v682_v12  ;;  %v1245_v5 = vrot.slane %v1244_v1, 4  ;;  %v2421_v11 = vld [vmem:[%s3174_s17 + $0xb4] sm:$0x1]  ;;  %v2422_v12 = vld [vmem:[%s3174_s17 + $0xb8] sm:$0xf] }
  0x4a   : > { %2786 = vmatpush3.bf16.msra.mxu0 %v3018_v25  ;;  %v1199_v25 = vshll.u32 %v2412_v20, 16  ;;  %v1269_v21 = vshll.u32 %v2422_v12, 16 }
  0x4b   : > { %2810 = vmatpush3.bf16.msra.mxu1 %v3019_v31  ;;  %2819 = vmatprep.subr.bf16.mxu0 %v3022_v51  ;;  %v1198_v31 = vrot.slane %v1196_v24, 4  ;;  %v2425_v24 = vld [vmem:[%s3174_s17 + $0xc4] sm:$0x1] }
  0x4c   : > { %2843 = vmatprep.subr.bf16.mxu1 %v3023_v55  ;;  %v1201_v32 = vrot.slane %v1199_v25, 5 }
  0x4d   : > { %2788 = vmatmul.mubr.bf16.vlgmr.msra.gmra.mxu0 %v2329_v60  ;;  %v3037_v60 = vld [vmem:[%s3523_s1 + $0x148] sm:$0xff]  }
  0x4e   : > { %2812 = vmatmul.mubr.bf16.vlgmr.msra.gmra.mxu1 %v3021_v61  ;;  %2820 = vmatpush3.bf16.msra.mxu0 %v3022_v51  ;;  %v1202_v39 = vor.u32 %v1201_v32, %v1198_v31  ;;  %v1247_v51 = vshll.u32 %v2419_v42, 16  ;;  %v1222_v61 = vsel %vm3246_vm2, %v1217_v52, %v1221_v37  ;;  %v2427_v32 = vld [vmem:[%s3174_s17 + $0xcc] sm:$0x1]  ;;  %v1289_v37 = vshll.u32 %v2425_v24, 16  ;;  %v2536_v24 = vld [vmem:[%s3174_s17 + $0x28] sm:$0xf] }
  0x4f   : > { %2844 = vmatpush3.bf16.msra.mxu1 %v3023_v55  ;;  %2821 = vmatprep.subr.bf16.mxu0 %v3024_v4  ;;  %v3036_v55 = vld [vmem:[%s3523_s1 + $0x108] sm:$0xff]   ;;  %v1303_v44 = vshll.u32 %v2427_v32, 16  ;;  %v2539_v32 = vld [vmem:[%s3174_s17 + $0x34] sm:$0x1] }
  0x50   : > { %2845 = vmatprep.subr.bf16.mxu1 %v3025_v7  ;;  %2791 = vmatprep.mubr.bf16.mxu0 %v2330_v8  ;;  %v1203_v48 = vrot.slane %v1202_v39, 4  ;;  %v1249_v2 = vrot.slane %v1247_v51, 5  ;;  %v1297_v39 = vshll.u32 %v2426_v29, 16  ;;  %v1291_v51 = vrot.slane %v1289_v37, 5 }
  0x51   : > { %2815 = vmatprep.mubr.bf16.mxu1 %v3028_v6  ;;  %v3039_v6 = vld [vmem:[%s3523_s1 + $0x140] sm:$0xff]   ;;  %v1305_v54 = vrot.slane %v1303_v44, 5  ;;  %v1879_v37 = vshll.u32 %v2536_v24, 16 }
  0x52   : > { %2822 = vmatpush3.bf16.msra.mxu0 %v3024_v4  ;;  %v1208_v56 = vsel %vm3246_vm2, %v1203_v48, %v1207_v34  ;;  %v3038_v4 = vld [vmem:[%s3523_s1 + $0x100] sm:$0xff]   ;;  %v1250_v8 = vsel %vm3246_vm2, %v1245_v5, %v1249_v2  ;;  %v1283_v34 = vshll.u32 %v2424_v23, 16  ;;  %v1299_v48 = vrot.slane %v1297_v39, 5  ;;  %v3060_v5 = vld [vmem:[%s3174_s17 + $0x8] ss:$8 sps:$4 sm:$0xff]  }
  0x53   : > { %2846 = vmatpush3.bf16.msra.mxu1 %v3025_v7  ;;  %2823 = vmatprep.subr.bf16.mxu0 %v3026_v10  ;;  %v2444_v63 = vcombine.low %v1208_v56, %v1222_v61  ;;  %v1236_v7 = vsel %vm3246_vm2, %v1231_v3, %v1235_v0  ;;  %v3050_v2 = vld [vmem:[%s3523_s1 + $0x1a0] sm:$0xff]  }
  0x54   : > { %2847 = vmatprep.subr.bf16.mxu1 %v3027_v13  ;;  %v2445_v20 = vcombine.low %v1236_v7, %v1250_v8  ;;  %v1300_v53 = vor.u32 %v1299_v48, %v1296_v47  ;;  %v3051_v3 = vld [vmem:[%s3523_s1 + $0x1e0] sm:$0xff]   ;;  %v3053_v7 = vld [vmem:[%s3523_s1 + $0x1d8] sm:$0xff]   ;;  %v3054_v8 = vld [vmem:[%s3523_s1 + $0x190] sm:$0xff]   ;;  %v1899_v47 = vshll.u32 %v2539_v32, 16 }
  0x55   : > { %2792 = vmatmul.mubr.bf16.gmra.mxu0 %v2331_v14  ;;  %v2423_v14 = vld [vmem:[%s3174_s17 + $0xbc] sm:$0x1]  ;;  %v3069_v48 = vld [vmem:[%s3174_s17 + $0x70] ss:$8 sps:$4 sm:$0xff]   ;;  %v2543_v32 = vld [vmem:[%s3174_s17 + $0x44] sm:$0x1] }
  0x56   : > { %2824 = vmatpush3.bf16.msra.mxu0 %v3026_v10  ;;  %2816 = vmatmul.mubr.bf16.gmra.mxu1 %v3029_v15  ;;  %v2420_v10 = vld [vmem:[%s3174_s17 + $0xb0] sm:$0xf]  ;;  %v1275_v22 = vshll.u32 %v2423_v14, 16  ;;  %v1301_v61 = vrot.slane %v1300_v53, 4  ;;  %v3064_v14 = vld [vmem:[%s3523_s1 + $0x238] sm:$0xff]  }
  0x57   : > { %2848 = vmatpush3.bf16.msra.mxu1 %v3027_v13  ;;  %2825 = vmatprep.subr.bf16.mxu0 %v3030_v16  ;;  %v3043_v13 = vld [vmem:[%s3523_s1 + $0x1f8] sm:$0xff]   ;;  %v1252_v15 = vshrl.u32 %v2420_v10, 16 }
  0x58   : > { %2849 = vmatprep.subr.bf16.mxu1 %v3031_v17  ;;  %2835 = vmatprep.mubr.bf16.mxu0 %v3040_v19  ;;  %v3041_v19 = vld [vmem:[%s3174_s17 + $0xe8] ss:$8 sps:$4 sm:$0xff]   ;;  %v1277_v31 = vrot.slane %v1275_v22, 5  ;;  %v1306_v0 = vsel %vm3246_vm2, %v1301_v61, %v1305_v54  ;;  %v3067_v61 = vld [vmem:[%s3174_s17 + $0x38] ss:$8 sps:$4 sm:$0xff]  }
  0x59   : > { %2859 = vmatprep.mubr.bf16.mxu1 %v2444_v63  ;;  %v1254_v25 = vrot.slane %v1252_v15, 4  ;;  %v2528_v15 = vld [vmem:[%s3174_s17 + $0x8] sm:$0xf] }
  0x5a   : > { %2826 = vmatpush3.bf16.msra.mxu0 %v3030_v16  ;;  %v1255_v16 = vshll.u32 %v2420_v10, 16  ;;  %v3056_v10 = vld [vmem:[%s3523_s1 + $0x188] sm:$0xff]  }
  0x5b   : > { %2850 = vmatpush3.bf16.msra.mxu1 %v3031_v17  ;;  %2827 = vmatprep.subr.bf16.mxu0 %v3032_v18  ;;  %v1261_v17 = vshll.u32 %v2421_v11, 16  ;;  %v3057_v11 = vld [vmem:[%s3523_s1 + $0x1c8] sm:$0xff]  }
  0x5c   : > { %2851 = vmatprep.subr.bf16.mxu1 %v3033_v30  ;;  %v1257_v26 = vrot.slane %v1255_v16, 5  ;;  %v2529_v16 = vld [vmem:[%s3174_s17 + $0xc] sm:$0x1] }
  0x5d   : > { %v1263_v27 = vrot.slane %v1261_v17, 5  ;;  %v2530_v17 = vld [vmem:[%s3174_s17 + $0x10] sm:$0xf]  ;;  %v1829_v22 = vshll.u32 %v2529_v16, 16 }
  0x5e   : > { %2828 = vmatpush3.bf16.msra.mxu0 %v3032_v18  ;;  %v1266_v18 = vshrl.u32 %v2422_v12, 16  ;;  %v1258_v36 = vor.u32 %v1257_v26, %v1254_v25  ;;  %v3058_v12 = vld [vmem:[%s3523_s1 + $0x180] sm:$0xff]   ;;  %v1837_v25 = vshll.u32 %v2530_v17, 16  ;;  %v2537_v26 = vld [vmem:[%s3174_s17 + $0x2c] sm:$0x1] }
  0x5f   : > { %2852 = vmatpush3.bf16.msra.mxu1 %v3033_v30  ;;  %2829 = vmatprep.subr.bf16.mxu0 %v3034_v33  ;;  %v1271_v30 = vrot.slane %v1269_v21, 5  ;;  %v1823_v21 = vshll.u32 %v2528_v15, 16 }
  0x60   : > { %2853 = vmatprep.subr.bf16.mxu1 %v3035_v43  ;;  %v1268_v28 = vrot.slane %v1266_v18, 4  ;;  %v1259_v46 = vrot.slane %v1258_v36, 4  ;;  %v2531_v18 = vld [vmem:[%s3174_s17 + $0x14] sm:$0x1]  ;;  %v1876_v36 = vshrl.u32 %v2536_v24, 16 }
  0x61   : > { %v1825_v29 = vrot.slane %v1823_v21, 5  ;;  %v2533_v21 = vld [vmem:[%s3174_s17 + $0x1c] sm:$0x1] }
  0x62   : > { %2830 = vmatpush3.bf16.msra.mxu0 %v3034_v33  ;;  %v1280_v33 = vshrl.u32 %v2424_v23, 16  ;;  %v1272_v41 = vor.u32 %v1271_v30, %v1268_v28  ;;  %v1264_v52 = vsel %vm3246_vm2, %v1259_v46, %v1263_v27  ;;  %v1834_v23 = vshrl.u32 %v2530_v17, 16  ;;  %v2538_v27 = vld [vmem:[%s3174_s17 + $0x30] sm:$0xf] }
  0x63   : > { %2854 = vmatpush3.bf16.msra.mxu1 %v3035_v43  ;;  %2831 = vmatprep.subr.bf16.mxu0 %v3036_v55  ;;  %v1285_v43 = vrot.slane %v1283_v34, 5  ;;  %v1831_v34 = vrot.slane %v1829_v22, 5  ;;  %v1881_v46 = vrot.slane %v1879_v37, 5  ;;  %v3074_v37 = vld [vmem:[%s3523_s1 + $0x208] sm:$0xff]  }
  0x64   : > { %2855 = vmatprep.subr.bf16.mxu1 %v3037_v60  ;;  %v1282_v42 = vrot.slane %v1280_v33, 4  ;;  %v1273_v49 = vrot.slane %v1272_v41, 4  ;;  %v1836_v30 = vrot.slane %v1834_v23, 4  ;;  %v3063_v33 = vld [vmem:[%s3174_s17 + $0x60] ss:$8 sps:$4 sm:$0xff]   ;;  %v1890_v41 = vshrl.u32 %v2538_v27, 16 }
  0x66   : > { %2832 = vmatpush3.bf16.msra.mxu0 %v3036_v55  ;;  %v1286_v50 = vor.u32 %v1285_v43, %v1282_v42  ;;  %v3048_v55 = vld [vmem:[%s3523_s1 + $0x1a8] sm:$0xff]   ;;  %v1278_v56 = vsel %vm3246_vm2, %v1273_v49, %v1277_v31  ;;  %v1843_v31 = vshll.u32 %v2531_v18, 16  ;;  %v1893_v42 = vshll.u32 %v2538_v27, 16 }
  0x67   : > { %2856 = vmatpush3.bf16.msra.mxu1 %v3037_v60  ;;  %2833 = vmatprep.subr.bf16.mxu0 %v3038_v4  ;;  %v2446_v60 = vcombine.low %v1264_v52, %v1278_v56  ;;  %v3066_v43 = vld [vmem:[%s3174_s17 + $0x28] ss:$8 sps:$4 sm:$0xff]  }
  0x68   : > { %2857 = vmatprep.subr.bf16.mxu1 %v3039_v6  ;;  %v1287_v57 = vrot.slane %v1286_v50, 4  ;;  %v1845_v50 = vrot.slane %v1843_v31, 5  ;;  %v1895_v52 = vrot.slane %v1893_v42, 5  ;;  %v3068_v56 = vld [vmem:[%s3523_s1 + $0x228] sm:$0xff]   ;;  %v2541_v31 = vld [vmem:[%s3174_s17 + $0x3c] sm:$0x1] }
  0x6a   : > { %2834 = vmatpush3.bf16.msra.mxu0 %v3038_v4  ;;  %v1292_v63 = vsel %vm3246_vm2, %v1287_v57, %v1291_v51  ;;  %v3052_v4 = vld [vmem:[%s3523_s1 + $0x198] sm:$0xff]   ;;  %v1892_v51 = vrot.slane %v1890_v41, 4  ;;  %v1927_v41 = vshll.u32 %v2543_v32, 16 }
  0x6b   : > { %2858 = vmatpush3.bf16.msra.mxu1 %v3039_v6  ;;  %2867 = vmatprep.subr.bf16.mxu0 %v3042_v9  ;;  %v2447_v1 = vcombine.low %v1292_v63, %v1306_v0  ;;  %v3061_v6 = vld [vmem:[%s3174_s17 + $0x50] ss:$8 sps:$4 sm:$0xff]  }
  0x6c   : > { %2891 = vmatprep.subr.bf16.mxu1 %v3043_v13  ;;  %v1896_v57 = vor.u32 %v1895_v52, %v1892_v51 }
  0x6d   : > { %2836 = vmatmul.mubr.bf16.vlgmr.msra.gmra.mxu0 %v3041_v19  ;;  %v3062_v19 = vld [vmem:[%s3174_s17 + $0x18] ss:$8 sps:$4 sm:$0xff]  }
  0x6e   : > { %2860 = vmatmul.mubr.bf16.vlgmr.msra.gmra.mxu1 %v2445_v20  ;;  %2868 = vmatpush3.bf16.msra.mxu0 %v3042_v9  ;;  %v3055_v9 = vld [vmem:[%s3523_s1 + $0x1d0] sm:$0xff]   ;;  %v1820_v20 = vshrl.u32 %v2528_v15, 16  ;;  %v1897_v0 = vrot.slane %v1896_v57, 4  ;;  %v3072_v15 = vld [vmem:[%s3523_s1 + $0x218] sm:$0xff]  }
  0x6f   : > { %2892 = vmatpush3.bf16.msra.mxu1 %v3043_v13  ;;  %2869 = vmatprep.subr.bf16.mxu0 %v3044_v40  ;;  %v3059_v13 = vld [vmem:[%s3523_s1 + $0x1c0] sm:$0xff]  }
  0x70   : > { %2893 = vmatprep.subr.bf16.mxu1 %v3045_v45  ;;  %2839 = vmatprep.mubr.bf16.mxu0 %v3046_v35  ;;  %v1822_v28 = vrot.slane %v1820_v20, 4  ;;  %v1839_v35 = vrot.slane %v1837_v25, 5  ;;  %v3073_v20 = vld [vmem:[%s3523_s1 + $0x210] sm:$0xff]  }
  0x71   : > { %2863 = vmatprep.mubr.bf16.mxu1 %v2446_v60 }
  0x72   : > { %2870 = vmatpush3.bf16.msra.mxu0 %v3044_v40  ;;  %v1826_v39 = vor.u32 %v1825_v29, %v1822_v28  ;;  %v1885_v40 = vshll.u32 %v2537_v26, 16  ;;  %v1840_v44 = vor.u32 %v1839_v35, %v1836_v30  ;;  %v2535_v26 = vld [vmem:[%s3174_s17 + $0x24] sm:$0x1] }
  0x73   : > { %2894 = vmatpush3.bf16.msra.mxu1 %v3045_v45  ;;  %2871 = vmatprep.subr.bf16.mxu0 %v3048_v55  ;;  %v1878_v45 = vrot.slane %v1876_v36, 4  ;;  %v1871_v36 = vshll.u32 %v2535_v26, 16 }
  0x74   : > { %2895 = vmatprep.subr.bf16.mxu1 %v3049_v58  ;;  %v1827_v49 = vrot.slane %v1826_v39, 4  ;;  %v1841_v53 = vrot.slane %v1840_v44, 4  ;;  %v1913_v39 = vshll.u32 %v2541_v31, 16 }
  0x75   : > { %2840 = vmatmul.mubr.bf16.gmra.mxu0 %v3047_v62  ;;  %v1882_v54 = vor.u32 %v1881_v46, %v1878_v45  ;;  %v1873_v45 = vrot.slane %v1871_v36, 5  ;;  %v3075_v46 = vld [vmem:[%s3523_s1 + $0x200] sm:$0xff]  }
  0x76   : > { %2872 = vmatpush3.bf16.msra.mxu0 %v3048_v55  ;;  %2864 = vmatmul.mubr.bf16.gmra.mxu1 %v2447_v1  ;;  %v1887_v55 = vrot.slane %v1885_v40, 5  ;;  %v1832_v62 = vsel %vm3246_vm2, %v1827_v49, %v1831_v34  ;;  %v1846_v63 = vsel %vm3246_vm2, %v1841_v53, %v1845_v50  ;;  %v3070_v1 = vld [vmem:[%s3174_s17 + $0x80] ss:$8 sps:$4 sm:$0xff]   ;;  %v1857_v34 = vshll.u32 %v2533_v21, 16 }
  0x77   : > { %2896 = vmatpush3.bf16.msra.mxu1 %v3049_v58  ;;  %2873 = vmatprep.subr.bf16.mxu0 %v3050_v2  ;;  %v1901_v58 = vrot.slane %v1899_v47, 5  ;;  %v1883_v60 = vrot.slane %v1882_v54, 4  ;;  %v1929_v50 = vrot.slane %v1927_v41, 5 }
  0x78   : > { %2897 = vmatprep.subr.bf16.mxu1 %v3051_v3  ;;  %2883 = vmatprep.mubr.bf16.mxu0 %v3060_v5  ;;  %v2532_v5 = vld [vmem:[%s3174_s17 + $0x18] sm:$0xf] }
  0x79   : > { %2907 = vmatprep.mubr.bf16.mxu1 %v3061_v6  ;;  %v2534_v6 = vld [vmem:[%s3174_s17 + $0x20] sm:$0xf] }
  0x7a   : > { %2874 = vmatpush3.bf16.msra.mxu0 %v3050_v2  ;;  %v1888_v2 = vsel %vm3246_vm2, %v1883_v60, %v1887_v55 }
  0x7b   : > { %2898 = vmatpush3.bf16.msra.mxu1 %v3051_v3  ;;  %2875 = vmatprep.subr.bf16.mxu0 %v3052_v4  ;;  %v3071_v3 = vld [vmem:[%s3523_s1 + $0x220] sm:$0xff]  }
  0x7c   : > { %2899 = vmatprep.subr.bf16.mxu1 %v3053_v7 }
  0x7e   : > { %2876 = vmatpush3.bf16.msra.mxu0 %v3052_v4  ;;  %v1902_v4 = vsel %vm3246_vm2, %v1897_v0, %v1901_v58 }
  0x7f   : > { %2900 = vmatpush3.bf16.msra.mxu1 %v3053_v7  ;;  %2877 = vmatprep.subr.bf16.mxu0 %v3054_v8  ;;  %v2560_v7 = vcombine.low %v1832_v62, %v1846_v63 }
  0x80   : > { %2901 = vmatprep.subr.bf16.mxu1 %v3055_v9 }
  0x82   : > { %2878 = vmatpush3.bf16.msra.mxu0 %v3054_v8  ;;  %v2540_v8 = vld [vmem:[%s3174_s17 + $0x38] sm:$0xf] }
  0x83   : > { %2902 = vmatpush3.bf16.msra.mxu1 %v3055_v9  ;;  %2879 = vmatprep.subr.bf16.mxu0 %v3056_v10  ;;  %v2542_v9 = vld [vmem:[%s3174_s17 + $0x40] sm:$0xf]  ;;  %v1904_v16 = vshrl.u32 %v2540_v8, 16  ;;  %v1907_v17 = vshll.u32 %v2540_v8, 16 }
  0x84   : > { %2903 = vmatprep.subr.bf16.mxu1 %v3057_v11  ;;  %v1918_v18 = vshrl.u32 %v2542_v9, 16 }
  0x85   : > { %v1906_v27 = vrot.slane %v1904_v16, 4  ;;  %v1909_v28 = vrot.slane %v1907_v17, 5 }
  0x86   : > { %2880 = vmatpush3.bf16.msra.mxu0 %v3056_v10  ;;  %v2562_v10 = vcombine.low %v1888_v2, %v1902_v4  ;;  %v1920_v29 = vrot.slane %v1918_v18, 4 }
  0x87   : > { %2904 = vmatpush3.bf16.msra.mxu1 %v3057_v11  ;;  %2881 = vmatprep.subr.bf16.mxu0 %v3058_v12  ;;  %v1848_v11 = vshrl.u32 %v2532_v5, 16 }
  0x88   : > { %2905 = vmatprep.subr.bf16.mxu1 %v3059_v13 }
  0x89   : > { %v1850_v22 = vrot.slane %v1848_v11, 4 }
  0x8a   : > { %2882 = vmatpush3.bf16.msra.mxu0 %v3058_v12  ;;  %v1851_v12 = vshll.u32 %v2532_v5, 16 }
  0x8b   : > { %2906 = vmatpush3.bf16.msra.mxu1 %v3059_v13  ;;  %2915 = vmatprep.subr.bf16.mxu0 %v3064_v14  ;;  %v1862_v13 = vshrl.u32 %v2534_v6, 16 }
  0x8c   : > { %2939 = vmatprep.subr.bf16.mxu1 %v3064_v14  ;;  %v1853_v23 = vrot.slane %v1851_v12, 5 }
  0x8d   : > { %2884 = vmatmul.mubr.bf16.vlgmr.msra.gmra.mxu0 %v3062_v19  ;;  %v1921_v19 = vshll.u32 %v2542_v9, 16  ;;  %v1864_v24 = vrot.slane %v1862_v13, 4 }
  0x8e   : > { %2908 = vmatmul.mubr.bf16.vlgmr.msra.gmra.mxu1 %v3063_v33  ;;  %2916 = vmatpush3.bf16.msra.mxu0 %v3064_v14  ;;  %v1854_v33 = vor.u32 %v1853_v23, %v1850_v22 }
  0x8f   : > { %2947 = vmatpush3.bf16.msra.mxu1 %v3064_v14  ;;  %2917 = vmatprep.subr.bf16.mxu0 %v3065_v38  ;;  %v1865_v14 = vshll.u32 %v2534_v6, 16  ;;  %v1923_v30 = vrot.slane %v1921_v19, 5 }
  0x90   : > { %2940 = vmatprep.subr.bf16.mxu1 %v3065_v38  ;;  %2887 = vmatprep.mubr.bf16.mxu0 %v3066_v43  ;;  %v1855_v42 = vrot.slane %v1854_v33, 4  ;;  %v1859_v43 = vrot.slane %v1857_v34, 5 }
  0x91   : > { %2911 = vmatprep.mubr.bf16.mxu1 %v3069_v48  ;;  %v1867_v25 = vrot.slane %v1865_v14, 5  ;;  %v1924_v40 = vor.u32 %v1923_v30, %v1920_v29  ;;  %v1915_v48 = vrot.slane %v1913_v39, 5 }
  0x92   : > { %2918 = vmatpush3.bf16.msra.mxu0 %v3065_v38  ;;  %v1860_v51 = vsel %vm3246_vm2, %v1855_v42, %v1859_v43 }
  0x93   : > { %2948 = vmatpush3.bf16.msra.mxu1 %v3065_v38  ;;  %2919 = vmatprep.subr.bf16.mxu0 %v3068_v56  ;;  %v1868_v35 = vor.u32 %v1867_v25, %v1864_v24  ;;  %v1910_v38 = vor.u32 %v1909_v28, %v1906_v27  ;;  %v1925_v49 = vrot.slane %v1924_v40, 4 }
  0x94   : > { %2941 = vmatprep.subr.bf16.mxu1 %v3068_v56 }
  0x95   : > { %2888 = vmatmul.mubr.bf16.gmra.mxu0 %v3067_v61  ;;  %v1869_v44 = vrot.slane %v1868_v35, 4  ;;  %v1911_v47 = vrot.slane %v1910_v38, 4  ;;  %v1930_v54 = vsel %vm3246_vm2, %v1925_v49, %v1929_v50 }
  0x96   : > { %2920 = vmatpush3.bf16.msra.mxu0 %v3068_v56  ;;  %2912 = vmatmul.mubr.bf16.gmra.mxu1 %v3070_v1 }
  0x97   : > { %2949 = vmatpush3.bf16.msra.mxu1 %v3068_v56  ;;  %2921 = vmatprep.subr.bf16.mxu0 %v3071_v3  ;;  %v1874_v52 = vsel %vm3246_vm2, %v1869_v44, %v1873_v45  ;;  %v1916_v53 = vsel %vm3246_vm2, %v1911_v47, %v1915_v48 }
  0x98   : > { %2942 = vmatprep.subr.bf16.mxu1 %v3071_v3  ;;  %2931 = vmatprep.mubr.bf16.mxu0 %v2560_v7  ;;  %v2561_v55 = vcombine.low %v1860_v51, %v1874_v52  ;;  %v2563_v56 = vcombine.low %v1916_v53, %v1930_v54 }
  0x99   : > { %2935 = vmatprep.mubr.bf16.mxu1 %v2562_v10 }
  0x9a   : > { %2922 = vmatpush3.bf16.msra.mxu0 %v3071_v3 }
  0x9b   : > { %2950 = vmatpush3.bf16.msra.mxu1 %v3071_v3  ;;  %2923 = vmatprep.subr.bf16.mxu0 %v3072_v15 }
  0x9c   : > { %2943 = vmatprep.subr.bf16.mxu1 %v3072_v15 }
  0x9e   : > { %2924 = vmatpush3.bf16.msra.mxu0 %v3072_v15 }
  0x9f   : > { %2951 = vmatpush3.bf16.msra.mxu1 %v3072_v15  ;;  %2925 = vmatprep.subr.bf16.mxu0 %v3073_v20 }
  0xa0   : > { %2944 = vmatprep.subr.bf16.mxu1 %v3073_v20 }
  0xa2   : > { %2926 = vmatpush3.bf16.msra.mxu0 %v3073_v20 }
  0xa3   : > { %2952 = vmatpush3.bf16.msra.mxu1 %v3073_v20  ;;  %2927 = vmatprep.subr.bf16.mxu0 %v3074_v37 }
  0xa4   : > { %2945 = vmatprep.subr.bf16.mxu1 %v3074_v37 }
  0xa6   : > { %2928 = vmatpush3.bf16.msra.mxu0 %v3074_v37 }
  0xa7   : > { %2953 = vmatpush3.bf16.msra.mxu1 %v3074_v37  ;;  %2929 = vmatprep.subr.bf16.mxu0 %v3075_v46 }
  0xa8   : > { %2946 = vmatprep.subr.bf16.mxu1 %v3075_v46 }
  0xaa   : > { %2930 = vmatpush3.bf16.msra.mxu0 %v3075_v46 }
  0xab   : > { %2954 = vmatpush3.bf16.msra.mxu1 %v3075_v46 }
  0xad   : > { %2932 = vmatmul.mubr.bf16.vlgmr.msra.gmra.mxu0 %v2561_v55 }
  0xae   : > { %2936 = vmatmul.mubr.bf16.vlgmr.msra.gmra.mxu1 %v2563_v56 }
  0xed   : > { %v2741_v57 = vpop.f32.mrf.mxu0 }
  0xee   : > { %v2765_v60 = vpop.f32.mrf.mxu1 }
  0xef   : > { %v384_v58 = vpop.f32.mrf.mxu0  ;;  %v530_v46 = vadd.f32 %v2765_v60, %v2741_v57 }
  0xf0   : > { %v521_v62 = vpop.f32.mrf.mxu1 }
  0xf1   : > { %v2742_v61 = vpop.f32.mrf.mxu0  ;;  %v522_v50 = vadd.f32 %v521_v62, %v384_v58 }
  0xf2   : > { %v2766_v1 = vpop.f32.mrf.mxu1 }
  0xf3   : > { %v387_v63 = vpop.f32.mrf.mxu0  ;;  %v533_v54 = vadd.f32 %v2766_v1, %v2742_v61 }
  0xf4   : > { %v524_v3 = vpop.f32.mrf.mxu1 }
  0xf5   : > { %v2745_v0 = vpop.f32.mrf.mxu0  ;;  %v525_v60 = vadd.f32 %v524_v3, %v387_v63 }
  0xf6   : > { %v2769_v4 = vpop.f32.mrf.mxu1 }
  0xf7   : > { %v400_v2 = vpop.f32.mrf.mxu0  ;;  %v546_v48 = vadd.f32 %v2769_v4, %v2745_v0 }
  0xf8   : > { %v537_v5 = vpop.f32.mrf.mxu1 }
  0xf9   : > { %v2746_v59 = vpop.f32.mrf.mxu0  ;;  %v538_v52 = vadd.f32 %v537_v5, %v400_v2 }
  0xfa   : > { %v2770_v8 = vpop.f32.mrf.mxu1 }
  0xfb   : > { %v403_v6 = vpop.f32.mrf.mxu0 }
  0xfc   : > { %v540_v10 = vpop.f32.mrf.mxu1 }
  0xfd   : > { %v541_v58 = vadd.f32 %v540_v10, %v403_v6 }
 0x10d   : > { %v2789_v7 = vpop.f32.mrf.mxu0 }
 0x10e   : > { %v2813_v11 = vpop.f32.mrf.mxu1  ;;  %v831_v51 = vadd.f32 %v2789_v7, %v530_v46 }
 0x10f   : > { %v798_v9 = vpop.f32.mrf.mxu0 }
 0x110   : > { %v969_v13 = vpop.f32.mrf.mxu1  ;;  %v829_v55 = vadd.f32 %v798_v9, %v522_v50 }
 0x111   : > { %v2790_v12 = vpop.f32.mrf.mxu0 }
 0x112   : > { %v2814_v15 = vpop.f32.mrf.mxu1  ;;  %v832_v0 = vadd.f32 %v2790_v12, %v533_v54  ;;  %v1000_v46 = vadd.f32 %v969_v13, %v829_v55 }
 0x113   : > { %v801_v14 = vpop.f32.mrf.mxu0 }
 0x114   : > { %v972_v17 = vpop.f32.mrf.mxu1  ;;  %v830_v2 = vadd.f32 %v801_v14, %v525_v60  ;;  %v1003_v9 = vadd.f32 %v2814_v15, %v832_v0 }
 0x115   : > { %v2793_v16 = vpop.f32.mrf.mxu0 }
 0x116   : > { %v2817_v19 = vpop.f32.mrf.mxu1  ;;  %v835_v53 = vadd.f32 %v2793_v16, %v546_v48 }
 0x117   : > { %v814_v18 = vpop.f32.mrf.mxu0 }
 0x118   : > { %v985_v21 = vpop.f32.mrf.mxu1  ;;  %v1006_v62 = vadd.f32 %v2817_v19, %v835_v53 }
 0x119   : > { %v2794_v20 = vpop.f32.mrf.mxu0 }
 0x11a   : > { %v2818_v23 = vpop.f32.mrf.mxu1 }
 0x11b   : > { %v817_v22 = vpop.f32.mrf.mxu0 }
 0x11c   : > { %v988_v25 = vpop.f32.mrf.mxu1  ;;  %v834_v48 = vadd.f32 %v817_v22, %v541_v58 }
 0x12d   : > { %v2837_v24 = vpop.f32.mrf.mxu0 }
 0x12e   : > { %v2861_v27 = vpop.f32.mrf.mxu1 }
 0x12f   : > { %v1140_v26 = vpop.f32.mrf.mxu0 }
 0x130   : > { %v1422_v29 = vpop.f32.mrf.mxu1  ;;  %v1171_v50 = vadd.f32 %v1140_v26, %v1000_v46 }
 0x131   : > { %v2838_v28 = vpop.f32.mrf.mxu0 }
 0x132   : > { %v2862_v31 = vpop.f32.mrf.mxu1  ;;  %v1174_v3 = vadd.f32 %v2838_v28, %v1003_v9  ;;  %v1453_v19 = vadd.f32 %v1422_v29, %v1171_v50 }
 0x133   : > { %v1143_v30 = vpop.f32.mrf.mxu0 }
 0x134   : > { %v3491_v33 = vpop.f32.mrf.mxu1  ;;  %v1456_v15 = vadd.f32 %v2862_v31, %v1174_v3 }
 0x135   : > { %v2841_v32 = vpop.f32.mrf.mxu0  ;;  %3528 = vst [vmem:[#allocation2_spill] sm:$0xff] %v3491_v33  ;;  %v549_v33 = vadd.f32 %v2770_v8, %v2746_v59 }
 0x136   : > { %v2865_v34 = vpop.f32.mrf.mxu1  ;;  %v1177_v1 = vadd.f32 %v2841_v32, %v1006_v62 }
 0x137   : > { %v1156_v35 = vpop.f32.mrf.mxu0  ;;  %v836_v7 = vadd.f32 %v2794_v20, %v549_v33 }
 0x138   : > { %v1438_v36 = vpop.f32.mrf.mxu1  ;;  %v1459_v12 = vadd.f32 %v2865_v34, %v1177_v1 }
 0x139   : > { %v2842_v37 = vpop.f32.mrf.mxu0  ;;  %v1007_v59 = vadd.f32 %v2818_v23, %v836_v7 }
 0x13a   : > { %v2866_v38 = vpop.f32.mrf.mxu1 }
 0x13b   : > { %v1159_v39 = vpop.f32.mrf.mxu0  ;;  %v1178_v6 = vadd.f32 %v2842_v37, %v1007_v59 }
 0x13c   : > { %v1441_v41 = vpop.f32.mrf.mxu1 }
 0x13d   : > { %v1460_v32 = vadd.f32 %v2866_v38, %v1178_v6 }
 0x14d   : > { %v2885_v40 = vpop.f32.mrf.mxu0 }
 0x14e   : > { %v2909_v42 = vpop.f32.mrf.mxu1 }
 0x14f   : > { %v1593_v43 = vpop.f32.mrf.mxu0 }
 0x150   : > { %v3493_v44 = vpop.f32.mrf.mxu1  ;;  %v1624_v26 = vadd.f32 %v1593_v43, %v1453_v19 }
 0x151   : > { %3529 = vst [vmem:[#allocation3_spill] sm:$0xff] %v3493_v44  ;;  %v2886_v45 = vpop.f32.mrf.mxu0  ;;  %v833_v44 = vadd.f32 %v814_v18, %v538_v52  ;;  %v1001_v18 = vadd.f32 %v972_v17, %v830_v2  ;;  %v3532_v17 = vld [vmem:[#allocation2_spill] sm:$0xff] }
 0x152   : > { %v3495_v47 = vpop.f32.mrf.mxu1 }
 0x153   : > { %3530 = vst [vmem:[#allocation4_spill] sm:$0xff] %v3495_v47  ;;  %v1596_v49 = vpop.f32.mrf.mxu0  ;;  %v1002_v47 = vadd.f32 %v2813_v11, %v831_v51  ;;  %v1004_v16 = vadd.f32 %v985_v21, %v833_v44  ;;  %v1005_v11 = vadd.f32 %v988_v25, %v834_v48  ;;  %v1172_v13 = vadd.f32 %v1143_v30, %v1001_v18 }
 0x154   : > { %v3497_v56 = vpop.f32.mrf.mxu1  ;;  %v1627_v25 = vadd.f32 %v2886_v45, %v1456_v15 }
 0x155   : > { %3531 = vst [vmem:[#allocation5_spill] sm:$0xff] %v3497_v56  ;;  %v2889_v57 = vpop.f32.mrf.mxu0  ;;  %v1173_v5 = vadd.f32 %v2837_v24, %v1002_v47  ;;  %v1175_v8 = vadd.f32 %v1156_v35, %v1004_v16  ;;  %v1176_v22 = vadd.f32 %v1159_v39, %v1005_v11 }
 0x156   : > { %v2913_v4 = vpop.f32.mrf.mxu1  ;;  %v1630_v24 = vadd.f32 %v2889_v57, %v1459_v12 }
 0x157   : > { %v1609_v61 = vpop.f32.mrf.mxu0  ;;  %v1455_v63 = vadd.f32 %v2861_v27, %v1173_v5  ;;  %v1457_v21 = vadd.f32 %v1438_v36, %v1175_v8  ;;  %v1454_v27 = vadd.f32 %v3532_v17, %v1172_v13  ;;  %v1458_v35 = vadd.f32 %v1441_v41, %v1176_v22 }
 0x158   : > { %v1780_v56 = vpop.f32.mrf.mxu1  ;;  %v1801_v29 = vadd.f32 %v2913_v4, %v1630_v24  ;;  %v3533_v36 = vld [vmem:[#allocation3_spill] sm:$0xff] }
 0x159   : > { %v2890_v10 = vpop.f32.mrf.mxu0  ;;  %v1626_v14 = vadd.f32 %v2885_v40, %v1455_v63  ;;  %v1628_v23 = vadd.f32 %v1609_v61, %v1457_v21  ;;  %v1795_v39 = vadd.f32 %v3533_v36, %v1624_v26  ;;  %v1625_v40 = vadd.f32 %v1596_v49, %v1454_v27 }
 0x15a   : > { %v2914_v20 = vpop.f32.mrf.mxu1  ;;  %v1631_v30 = vadd.f32 %v2890_v10, %v1460_v32  ;;  %v3534_v51 = vld [vmem:[#allocation4_spill] sm:$0xff] }
 0x15b   : > { %v1612_v33 = vpop.f32.mrf.mxu0  ;;  %v1797_v28 = vadd.f32 %v2909_v42, %v1626_v14  ;;  %v1799_v38 = vadd.f32 %v1780_v56, %v1628_v23  ;;  %v2572_v42 = vld [vmem:[%s3524_s2] ss:$0 sm:$0xff]  ;;  %v1798_v41 = vadd.f32 %v3534_v51, %v1627_v25 }
 0x15c   : > { %v1783_v34 = vpop.f32.mrf.mxu1  ;;  %v1629_v44 = vadd.f32 %v1612_v33, %v1458_v35  ;;  %v1802_v54 = vadd.f32 %v2914_v20, %v1631_v30  ;;  %v3535_v49 = vld [vmem:[#allocation5_spill] sm:$0xff] }
 0x15d   : > { %v1796_v60 = vadd.f32 %v3535_v49, %v1625_v40 }
 0x15e   : > { %v1800_v58 = vadd.f32 %v1783_v34, %v1629_v44 }
 0x16d   : > { %v2933_v37 = vpop.f32.mrf.mxu0 }
 0x16e   : > { %v2079_v31 = vadd.f32 %v2933_v37, %v1797_v28  ;;  %v2937_v43 = vpop.f32.mrf.mxu1 }
 0x16f   : > { %v2083_v45 = vadd.f32 %v2937_v43, %v1801_v29  ;;  %v2046_v47 = vpop.f32.mrf.mxu0 }
 0x170   : > { %v2077_v52 = vadd.f32 %v2046_v47, %v1795_v39  ;;  %v2062_v53 = vpop.f32.mrf.mxu1  ;;  %v2094_v0 = vadd.f32 %v2572_v42, %v2079_v31 }
 0x171   : > { %v2081_v55 = vadd.f32 %v2062_v53, %v1799_v38  ;;  %v2934_v57 = vpop.f32.mrf.mxu0  ;;  %v2098_v62 = vadd.f32 %v2572_v42, %v2083_v45 }
 0x172   : > { %v2080_v56 = vadd.f32 %v2934_v57, %v1798_v41  ;;  %v2938_v4 = vpop.f32.mrf.mxu1  ;;  %v2092_v2 = vadd.f32 %v2572_v42, %v2077_v52  ;;  %v2102_v50 = vmax.f32 %v2094_v0, 0.0 }
 0x173   : > { %v2084_v7 = vadd.f32 %v2938_v4, %v1802_v54  ;;  %v2049_v46 = vpop.f32.mrf.mxu0  ;;  %v2096_v1 = vadd.f32 %v2572_v42, %v2081_v55  ;;  %v2106_v18 = vmax.f32 %v2098_v62, 0.0 }
 0x174   : > { %v2095_v5 = vadd.f32 %v2572_v42, %v2080_v56  ;;  %v2078_v16 = vadd.f32 %v2049_v46, %v1796_v60  ;;  %v2065_v48 = vpop.f32.mrf.mxu1  ;;  %v2100_v11 = vmax.f32 %v2092_v2, 0.0 }
 0x175   : > { %v2099_v61 = vadd.f32 %v2572_v42, %v2084_v7  ;;  %v2082_v9 = vadd.f32 %v2065_v48, %v1800_v58  ;;  %v2104_v10 = vmax.f32 %v2096_v1, 0.0 }
 0x176   : > { %v2103_v59 = vmax.f32 %v2095_v5, 0.0  ;;  %v2093_v8 = vadd.f32 %v2572_v42, %v2078_v16 }
 0x177   : > { %v2107_v63 = vmax.f32 %v2099_v61, 0.0  ;;  %v2097_v3 = vadd.f32 %v2572_v42, %v2082_v9 }
 0x178   : > { %v2600_v12 = vpack.c.bf16 %v2103_v59, %v2102_v50  ;;  %v2101_v6 = vmax.f32 %v2093_v8, 0.0 }
 0x179   : > { %v2610_v19 = vpack.c.bf16 %v2107_v63, %v2106_v18  ;;  %v2105_v13 = vmax.f32 %v2097_v3, 0.0 }
 0x17a   : > { %2612 = vst [vmem:[%s226_s9 + $0x8] sm:$0xff] %v2600_v12   ;;  %v2595_v14 = vpack.c.bf16 %v2101_v6, %v2100_v11 }
 0x17b   : > { %2614 = vst [vmem:[%s226_s9 + $0x18] sm:$0xff] %v2610_v19   ;;  %v2605_v20 = vpack.c.bf16 %v2105_v13, %v2104_v10 }
 0x17c   : > { %2596 = vst [vmem:[%s226_s9] sm:$0xff] %v2595_v14  }
 0x17d   : > { %2613 = vst [vmem:[%s226_s9 + $0x10] sm:$0xff] %v2605_v20  }
 0x17e PF: > { %s13_s14 = sadd.s32 1, %s3098_s14   ;;  %s3536_s12 = smov %s3094_s13 }
 0x17f   : > { %p10_p6 = scmp.ge.s32.totalorder %s13_s14, 4   ;;  %s3537_s13 = smov %s3539_s15 }
 0x181   :  { %12 = sbr.rel (!%p10_p6) target bundleno = 2 (0x2), region = 81 }

// kernel: bottleneck_forward.5
= control target key start
LH: loop header
LB: loop body
LE: loop exit
PB: predicated region body
PF: predicated region fallthrough
CT: control target
= control target key end

     0   :  { %s1087_s18 = smov 0   ;;  %s1089_s19 = smov 0   ;;  %s1191_s0 = inlined_call_operand.vmem [shape: bf16[128,128], index: 0, kind: input, shape index: {}]   ;;  %s1192_s1 = inlined_call_operand.vmem [shape: bf16[128,128], index: 1, kind: input, shape index: {}]   ;;  %s1193_s2 = inlined_call_operand.vmem [shape: bf16[128,128], index: 2, kind: input, shape index: {}]   ;;  %s1194_s3 = inlined_call_operand.vmem [shape: bf16[128,128], index: 3, kind: input, shape index: {}]   ;;  %s1195_s4 = inlined_call_operand.vmem [shape: f32[1,128], index: 4, kind: input, shape index: {}]   ;;  %s1196_s5 = inlined_call_operand.vmem [shape: bf16[128,128], index: 5, kind: output, shape index: {}]  }
   0x1   :  { %s1091_s20 = smov 0  }
   0x2 LB: > { %s24_s21 = sadd.s32 1, %s1051_s19  ;;  %p840_p0 = scmp.ge.s32.totalorder %s1055_s20, 1  ;;  %s1055_s20 = sphi %s1091_s20, %s15_s20   ;;  %s1051_s19 = sphi %s1089_s19, %s1198_s19   ;;  %s1047_s18 = sphi %s1087_s18, %s1197_s18  }
   0x3   : > { %p25_p1 = scmp.ge.s32.totalorder %s24_s21, 2  ;;  %p239_p2 = scmp.lt.s32.totalorder %s1055_s20, 3 }
   0x5   : > { %s1200_s21 = smov (%p25_p1, %s24_s21), 0  ;;  %p240_p3 = pnand %p840_p0, %p239_p2 }
   0x6   : > { %s841_s24 = sshll.u32 (!%p240_p3), %s1047_s18, 3 }
   0x7   : > { %243 = sbr.rel (%p240_p3) target bundleno = 262 (0x106), region = 40  ;;  %p287_p4 = scmp.lt.s32.totalorder (!%p240_p3), %s841_s24, 15 }
   0xc   : > { %v1009_v0 = vld [vmem:[%s1194_s3 + $0x38] sm:$0xff]   ;;  %v1011_v2 = vld [vmem:[%s1194_s3 + $0x30] sm:$0xff]   ;;  %v1013_v4 = vld [vmem:[%s1194_s3 + $0x28] sm:$0xff]   ;;  %s1202_s24 = smov (!%p287_p4, %s841_s24), 15 }
   0xd   : > { %v1010_v1 = vld [vmem:[%s1192_s1 + $0x38] sm:$0xff]   ;;  %937 = vmatprep.subr.bf16.mxu0 %v1009_v0  ;;  %v1012_v3 = vld [vmem:[%s1192_s1 + $0x30] sm:$0xff]   ;;  %v1014_v5 = vld [vmem:[%s1192_s1 + $0x28] sm:$0xff]   ;;  %s1129_s14 = sshll.u32 %s1202_s24, 2 }
   0xe   : > { %961 = vmatprep.subr.bf16.mxu1 %v1010_v1  ;;  %938 = vmatpush3.bf16.msra.mxu0 %v1009_v0  ;;  %v1015_v6 = vld [vmem:[%s1194_s3 + $0x20] sm:$0xff]   ;;  %v1017_v8 = vld [vmem:[%s1194_s3 + $0x18] sm:$0xff]   ;;  %s1141_s25 = scalar_lea.vmem %s1193_s2, %s1129_s14  ;;  %v1019_v10 = vld [vmem:[%s1194_s3 + $0x10] sm:$0xff]   ;;  %s1150_s29 = scalar_lea.vmem %s1191_s0, %s1129_s14 }
   0xf   : > { %962 = vmatpush3.bf16.msra.mxu1 %v1010_v1  ;;  %939 = vmatprep.subr.bf16.mxu0 %v1011_v2  ;;  %v1016_v7 = vld [vmem:[%s1192_s1 + $0x20] sm:$0xff]   ;;  %v1018_v9 = vld [vmem:[%s1192_s1 + $0x18] sm:$0xff]   ;;  %v1020_v11 = vld [vmem:[%s1192_s1 + $0x10] sm:$0xff]   ;;  %s316_s23 = scalar_lea.vmem %s1196_s5, %s1129_s14 }
  0x10   : > { %963 = vmatprep.subr.bf16.mxu1 %v1012_v3  ;;  %v1025_v12 = vld [vmem:[%s1141_s25] sm:$0xff]   ;;  %v1021_v14 = vld [vmem:[%s1194_s3 + $0x8] sm:$0xff]   ;;  %v1029_v20 = vld [vmem:[%s1141_s25 + $0x10] sm:$0xff]  }
  0x11   : > { %v1026_v13 = vld [vmem:[%s1150_s29] sm:$0xff]   ;;  %953 = vmatprep.mubr.bf16.mxu0 %v1025_v12  ;;  %v1022_v15 = vld [vmem:[%s1192_s1 + $0x8] sm:$0xff]   ;;  %v1030_v21 = vld [vmem:[%s1150_s29 + $0x10] sm:$0xff]  }
  0x12   : > { %940 = vmatpush3.bf16.msra.mxu0 %v1011_v2  ;;  %977 = vmatprep.mubr.bf16.mxu1 %v1026_v13  ;;  %v1023_v16 = vld [vmem:[%s1194_s3] sm:$0xff]   ;;  %v1027_v18 = vld [vmem:[%s1141_s25 + $0x8] sm:$0xff]   ;;  %v1031_v22 = vld [vmem:[%s1141_s25 + $0x18] sm:$0xff]  }
  0x13   : > { %964 = vmatpush3.bf16.msra.mxu1 %v1012_v3  ;;  %941 = vmatprep.subr.bf16.mxu0 %v1013_v4  ;;  %v1024_v17 = vld [vmem:[%s1192_s1] sm:$0xff]   ;;  %v1028_v19 = vld [vmem:[%s1150_s29 + $0x8] sm:$0xff]   ;;  %v1032_v23 = vld [vmem:[%s1150_s29 + $0x18] sm:$0xff]  }
  0x14   : > { %965 = vmatprep.subr.bf16.mxu1 %v1014_v5  ;;  %v871_v28 = vld [vmem:[%s1195_s4] ss:$0 sm:$0xff] }
  0x16   : > { %942 = vmatpush3.bf16.msra.mxu0 %v1013_v4 }
  0x17   : > { %966 = vmatpush3.bf16.msra.mxu1 %v1014_v5  ;;  %943 = vmatprep.subr.bf16.mxu0 %v1015_v6 }
  0x18   : > { %967 = vmatprep.subr.bf16.mxu1 %v1016_v7 }
  0x1a   : > { %944 = vmatpush3.bf16.msra.mxu0 %v1015_v6 }
  0x1b   : > { %968 = vmatpush3.bf16.msra.mxu1 %v1016_v7  ;;  %945 = vmatprep.subr.bf16.mxu0 %v1017_v8 }
  0x1c   : > { %969 = vmatprep.subr.bf16.mxu1 %v1018_v9 }
  0x1e   : > { %946 = vmatpush3.bf16.msra.mxu0 %v1017_v8 }
  0x1f   : > { %970 = vmatpush3.bf16.msra.mxu1 %v1018_v9  ;;  %947 = vmatprep.subr.bf16.mxu0 %v1019_v10 }
  0x20   : > { %971 = vmatprep.subr.bf16.mxu1 %v1020_v11 }
  0x22   : > { %948 = vmatpush3.bf16.msra.mxu0 %v1019_v10 }
  0x23   : > { %972 = vmatpush3.bf16.msra.mxu1 %v1020_v11  ;;  %949 = vmatprep.subr.bf16.mxu0 %v1021_v14 }
  0x24   : > { %973 = vmatprep.subr.bf16.mxu1 %v1022_v15 }
  0x26   : > { %950 = vmatpush3.bf16.msra.mxu0 %v1021_v14 }
  0x27   : > { %974 = vmatpush3.bf16.msra.mxu1 %v1022_v15  ;;  %951 = vmatprep.subr.bf16.mxu0 %v1023_v16 }
  0x28   : > { %975 = vmatprep.subr.bf16.mxu1 %v1024_v17 }
  0x2a   : > { %952 = vmatpush3.bf16.msra.mxu0 %v1023_v16 }
  0x2b   : > { %976 = vmatpush3.bf16.msra.mxu1 %v1024_v17 }
  0x2d   : > { %954 = vmatmul.mubr.bf16.vlgmr.msra.gmra.mxu0 %v1027_v18 }
  0x2e   : > { %978 = vmatmul.mubr.bf16.vlgmr.msra.gmra.mxu1 %v1028_v19  ;;  %957 = vmatprep.mubr.bf16.mxu0 %v1029_v20 }
  0x2f   : > { %981 = vmatprep.mubr.bf16.mxu1 %v1030_v21 }
  0x35   : > { %958 = vmatmul.mubr.bf16.gmra.mxu0 %v1031_v22 }
  0x36   : > { %982 = vmatmul.mubr.bf16.gmra.mxu1 %v1032_v23 }
  0xed   : > { %v955_v24 = vpop.f32.mrf.mxu0 }
  0xee   : > { %v979_v25 = vpop.f32.mrf.mxu1 }
  0xef   : > { %v619_v26 = vadd.f32 %v979_v25, %v955_v24  ;;  %v473_v27 = vpop.f32.mrf.mxu0 }
  0xf0   : > { %v610_v29 = vpop.f32.mrf.mxu1 }
  0xf1   : > { %v611_v30 = vadd.f32 %v610_v29, %v473_v27  ;;  %v956_v31 = vpop.f32.mrf.mxu0  ;;  %v650_v33 = vadd.f32 %v871_v28, %v619_v26 }
  0xf2   : > { %v980_v32 = vpop.f32.mrf.mxu1 }
  0xf3   : > { %v622_v34 = vadd.f32 %v980_v32, %v956_v31  ;;  %v476_v35 = vpop.f32.mrf.mxu0  ;;  %v648_v37 = vadd.f32 %v871_v28, %v611_v30  ;;  %v658_v42 = vmax.f32 %v650_v33, 0.0 }
  0xf4   : > { %v613_v36 = vpop.f32.mrf.mxu1 }
  0xf5   : > { %v651_v38 = vadd.f32 %v871_v28, %v622_v34  ;;  %v614_v39 = vadd.f32 %v613_v36, %v476_v35  ;;  %v959_v40 = vpop.f32.mrf.mxu0  ;;  %v656_v48 = vmax.f32 %v648_v37, 0.0 }
  0xf6   : > { %v983_v41 = vpop.f32.mrf.mxu1 }
  0xf7   : > { %v659_v43 = vmax.f32 %v651_v38, 0.0  ;;  %v649_v44 = vadd.f32 %v871_v28, %v614_v39  ;;  %v635_v45 = vadd.f32 %v983_v41, %v959_v40  ;;  %v489_v46 = vpop.f32.mrf.mxu0 }
  0xf8   : > { %v626_v47 = vpop.f32.mrf.mxu1 }
  0xf9   : > { %v898_v49 = vpack.c.bf16 %v659_v43, %v658_v42  ;;  %v657_v50 = vmax.f32 %v649_v44, 0.0  ;;  %v627_v51 = vadd.f32 %v626_v47, %v489_v46  ;;  %v960_v52 = vpop.f32.mrf.mxu0  ;;  %v654_v55 = vadd.f32 %v871_v28, %v635_v45 }
  0xfa   : > { %v984_v53 = vpop.f32.mrf.mxu1 }
  0xfb   : > { %910 = vst [vmem:[%s316_s23 + $0x8] sm:$0xff] %v898_v49   ;;  %v893_v54 = vpack.c.bf16 %v657_v50, %v656_v48  ;;  %v638_v56 = vadd.f32 %v984_v53, %v960_v52  ;;  %v492_v57 = vpop.f32.mrf.mxu0  ;;  %v652_v59 = vadd.f32 %v871_v28, %v627_v51  ;;  %v662_v62 = vmax.f32 %v654_v55, 0.0 }
  0xfc   : > { %v629_v58 = vpop.f32.mrf.mxu1 }
  0xfd   : > { %894 = vst [vmem:[%s316_s23] sm:$0xff] %v893_v54   ;;  %v655_v60 = vadd.f32 %v871_v28, %v638_v56  ;;  %v630_v61 = vadd.f32 %v629_v58, %v492_v57  ;;  %v660_v1 = vmax.f32 %v652_v59, 0.0 }
  0xff   : > { %v663_v63 = vmax.f32 %v655_v60, 0.0  ;;  %v653_v0 = vadd.f32 %v871_v28, %v630_v61 }
 0x101   : > { %v908_v2 = vpack.c.bf16 %v663_v63, %v662_v62  ;;  %v661_v3 = vmax.f32 %v653_v0, 0.0 }
 0x103   : > { %912 = vst [vmem:[%s316_s23 + $0x18] sm:$0xff] %v908_v2   ;;  %v903_v4 = vpack.c.bf16 %v661_v3, %v660_v1 }
 0x105   : > { %911 = vst [vmem:[%s316_s23 + $0x10] sm:$0xff] %v903_v4  }
 0x106 PF: > { %s15_s20 = sadd.s32 1, %s1055_s20   ;;  %s1197_s18 = smov %s1051_s19 }
 0x107   : > { %p12_p5 = scmp.ge.s32.totalorder %s15_s20, 4   ;;  %s1198_s19 = smov %s1200_s21 }
 0x109   :  { %14 = sbr.rel (!%p12_p5) target bundleno = 2 (0x2), region = 82 }

</bundles_post_ra>
